<compile_context>
chip_gen: v6e
topology: v6e:2x2x1
jax: 0.10.0
libtpu: 0.0.40
codegen_flags: <defaults>
</compile_context>

<pallas_src>
import jax
import jax.numpy as jnp
from jax import lax
from jax.experimental import pallas as pl
from jax.experimental.pallas import tpu as pltpu

# ----------------------------- small config ---------------------------------
B, C, H, W = 2, 4, 8, 8        # input (2, 4, 8, 8) NCHW
T = H                          # token sequence length produced by the encoder
BT = B * T                     # 16 flattened (batch, position) rows
D = 128                        # n_embd     (orig 1024)
NH = 4                         # n_head
HD = D // NH                   # 32
NLAYER = 2                     # n_layer    (orig 12)
VOCAB = 128                    # vocab_size (orig 2048*3)
KCODES = 64                    # VQ codebook size
DCODE = 32                     # VQ code dim
FF = 4 * D
BLOCK_SIZE = 16                # GPT block_size (orig 1024)
PKEEP = 0.3


def _ln(x, g, b):
    mu = jnp.mean(x, axis=-1, keepdims=True)
    var = jnp.mean((x - mu) ** 2, axis=-1, keepdims=True)
    return (x - mu) * lax.rsqrt(var + 1e-5) * g + b


# ------------------- kernel 1: VQ encode + masking + sos shift ----------------
def encode_mask_kernel(x_ref, wenc_ref, cb_ref, cbsq_ref, keep_ref, rand_ref, out_ref):
    f32 = jnp.float32
    # mean-over-W + C->DCODE projection folded into ONE matmul (wenc prepared host-side)
    f = jnp.dot(x_ref[...], wenc_ref[...], preferred_element_type=f32)           # (BT, DCODE)
    # argmin_k ||f - cb_k||^2 ; the |f|^2 term is constant per row -> dropped.
    fk = lax.dot_general(f, cb_ref[...], (((1,), (1,)), ((), ())),
                         preferred_element_type=f32)                             # (BT, K)
    dist = cbsq_ref[...] - 2.0 * fk
    kid = lax.broadcasted_iota(jnp.int32, (BT, KCODES), 1)
    dmin = jnp.min(dist, axis=-1, keepdims=True)
    idx = jnp.min(jnp.where(dist <= dmin, kid, KCODES), axis=-1, keepdims=True)  # (BT,1) target

    # token masking: keep with prob pkeep else random token.
    # (random bits come from host jax.random -- pltpu.prng_* has no CPU/interpret lowering)
    new_idx = jnp.where(keep_ref[...] != 0, idx, rand_ref[...])                  # (BT, 1)

    # sos prepend + drop-last, per batch block: row r -> sos(=0) if r%T==0 else new_idx[r-1]
    # expressed as a sublane slice+concat shift (no shift-matrix matmul, no roll primitive).
    prev = jnp.concatenate([jnp.zeros((1, 1), jnp.int32), new_idx[:-1, :]], axis=0)
    rpos = lax.broadcasted_iota(jnp.int32, (BT, 1), 0)
    tok_in = jnp.where(jnp.bitwise_and(rpos, T - 1) == 0, 0, prev)               # (BT, 1)

    # lane-dense int32 output slab: col 0 = target index, col 1 = GPT input token
    col = lax.broadcasted_iota(jnp.int32, (BT, 128), 1)
    out_ref[...] = jnp.where(col == 0, idx, 0) + jnp.where(col == 1, tok_in, 0)


# ------------- kernel 2: embedding row gather (scalar-prefetch) + pos emb ------------
def embed_kernel(tok_ids_ref, wte_row_ref, wpe_row_ref, out_ref):
    del tok_ids_ref  # only used inside the index_maps (scalar prefetch)
    out_ref[...] = wte_row_ref[...] + wpe_row_ref[...]


# --------------------- kernel 3: GPT blocks + final LN + head ------------------------
def gpt_kernel(h0_ref,
               ln1g_ref, ln1b_ref, wqkv_ref, bqkv_ref, wproj_ref, bproj_ref,
               ln2g_ref, ln2b_ref, wfc_ref, bfc_ref, wfc2_ref, bfc2_ref,
               lnfg_ref, lnfb_ref, whead_ref,
               logits_ref, h_ref):
    f32, bf16 = jnp.float32, jnp.bfloat16
    l = pl.program_id(1)                              # layer axis ("arbitrary", innermost)

    @pl.when(l == 0)
    def _():
        h_ref[...] = h0_ref[...]                      # residual lives in VMEM scratch

    h = h_ref[...]                                    # (T, D) f32: this batch's rows only

    # ---- causal self-attention: per-head matmuls, no replicated K/V, no zero MACs ----
    hn = _ln(h, ln1g_ref[...], ln1b_ref[...])
    qkv = jnp.dot(hn.astype(bf16), wqkv_ref[...],
                  preferred_element_type=f32) + bqkv_ref[...]                    # (T, 3D)
    q, k, v = qkv[:, 0:D], qkv[:, D:2 * D], qkv[:, 2 * D:3 * D]
    ri = lax.broadcasted_iota(jnp.int32, (T, T), 0)
    ci = lax.broadcasted_iota(jnp.int32, (T, T), 1)
    causal = ri >= ci
    scale = 1.0 / float(HD) ** 0.5
    heads = []
    # TODO(synk): at original T=1024 switch to flash-style KV tiling over a (B*NH, T, HD)
    # batched layout instead of materializing full (T, T) scores per head.
    for hh in range(NH):                              # static unroll over NH heads
        sl = slice(hh * HD, (hh + 1) * HD)
        s = lax.dot_general(q[:, sl].astype(bf16), k[:, sl].astype(bf16),
                            (((1,), (1,)), ((), ())),
                            preferred_element_type=f32) * scale                  # (T, T)
        s = jnp.where(causal, s, -1e30)
        e = jnp.exp(s - jnp.max(s, axis=-1, keepdims=True))
        p = e / jnp.sum(e, axis=-1, keepdims=True)
        heads.append(jnp.dot(p.astype(bf16), v[:, sl].astype(bf16),
                             preferred_element_type=f32))                        # (T, HD)
    att = jnp.concatenate(heads, axis=-1)             # (T, D): heads land in final lane slots
    h = h + jnp.dot(att.astype(bf16), wproj_ref[...],
                    preferred_element_type=f32) + bproj_ref[...]

    # ---- MLP ----
    hn2 = _ln(h, ln2g_ref[...], ln2b_ref[...])
    m1 = jnp.dot(hn2.astype(bf16), wfc_ref[...],
                 preferred_element_type=f32) + bfc_ref[...]                       # (T, FF)
    # TODO(synk): torch nn.GELU default is the exact erf form; tanh approximation used here.
    m1 = jax.nn.gelu(m1, approximate=True)
    h = h + jnp.dot(m1.astype(bf16), wfc2_ref[...],
                    preferred_element_type=f32) + bfc2_ref[...]
    h_ref[...] = h

    @pl.when(l == NLAYER - 1)
    def _():
        hf = _ln(h, lnfg_ref[...], lnfb_ref[...])
        logits_ref[...] = jnp.dot(hf.astype(bf16), whead_ref[...],
                                  preferred_element_type=f32)                     # (T, VOCAB)


# ------------------------------ host-side wrapper ------------------------------
def _const_spec(shape):
    return pl.BlockSpec(shape, lambda b, l: (0,) * len(shape))


def _layer_spec(shape):   # stacked (NLAYER, r, c) -> streamed (r, c) per layer step
    return pl.BlockSpec((None,) + tuple(shape[1:]), lambda b, l: (l, 0, 0))


@jax.jit
def transformer_forward(x_nchw, prep, rng_key):
    f32 = jnp.float32
    # layout plumbing: (B,C,H,W) -> token rows (b,h), lane axis (c,w) of width C*W
    x_flat = jnp.transpose(x_nchw, (0, 2, 1, 3)).reshape(BT, C * W)

    kb, kr = jax.random.split(rng_key)
    keep = (jax.random.uniform(kb, (BT, 1)) < PKEEP).astype(jnp.int32)
    rand_idx = jax.random.randint(kr, (BT, 1), 0, VOCAB, dtype=jnp.int32)

    # ---- 1) VQ encode + masking + sos shift -> lane-dense int32 slab ----
    slab = pl.pallas_call(
        encode_mask_kernel,
        out_shape=jax.ShapeDtypeStruct((BT, 128), jnp.int32),
    )(x_flat, prep['w_enc2'], prep['codebook'], prep['cb_sq'], keep, rand_idx)
    target = slab[:, 0]                               # (BT,) VQ indices (int32; torch: int64)
    tok = slab[:, 1]                                  # (BT,) masked + sos-shifted GPT tokens

    # ---- 2) embedding gather via scalar-prefetch row indexing + positional emb ----
    h0 = pl.pallas_call(
        embed_kernel,
        grid_spec=pltpu.PrefetchScalarGridSpec(
            num_scalar_prefetch=1,
            grid=(BT,),
            in_specs=[pl.BlockSpec((None, 1, D), lambda i, ids: (ids[i], 0, 0)),  # wte row gather
                      pl.BlockSpec((None, 1, D), lambda i, ids: (i, 0, 0))],      # wpe row
            out_specs=pl.BlockSpec((None, 1, D), lambda i, ids: (i, 0, 0)),
        ),
        out_shape=jax.ShapeDtypeStruct((BT, 1, D), f32),
        compiler_params=pltpu.CompilerParams(dimension_semantics=("arbitrary",)),
    )(tok, prep['wte3'], prep['wpe3'])
    h0 = h0.reshape(BT, D)

    # ---- 3) GPT: grid = (batch "parallel", layer "arbitrary"); weights streamed per layer ----
    layer_arrays = [prep['ln1_g'], prep['ln1_b'], prep['w_qkv'], prep['b_qkv'],
                    prep['w_proj'], prep['b_proj'], prep['ln2_g'], prep['ln2_b'],
                    prep['w_fc'], prep['b_fc'], prep['w_fc2'], prep['b_fc2']]
    layer_specs = [_layer_spec(a.shape) for a in layer_arrays]

    logits = pl.pallas_call(
        gpt_kernel,
        grid_spec=pltpu.PrefetchScalarGridSpec(
            num_scalar_prefetch=0,
            grid=(B, NLAYER),
            in_specs=[pl.BlockSpec((T, D), lambda b, l: (b, 0))]     # h0: this batch's rows
                     + layer_specs
                     + [_const_spec(prep['lnf_g'].shape),
                        _const_spec(prep['lnf_b'].shape),
                        _const_spec(prep['w_head'].shape)],
            out_specs=pl.BlockSpec((T, VOCAB), lambda b, l: (b, 0)),
            scratch_shapes=[pltpu.VMEM((T, D), f32)],                # residual accumulator
        ),
        out_shape=jax.ShapeDtypeStruct((BT, VOCAB), f32),
        compiler_params=pltpu.CompilerParams(
            dimension_semantics=("parallel", "arbitrary"),
            vmem_limit_bytes=64 * 1024 * 1024),
    )(h0, *layer_arrays, prep['lnf_g'], prep['lnf_b'], prep['w_head'])

    return logits.reshape(B, T, VOCAB), target.reshape(B, T)


# ------------------------------ parameters -----------------------------------
def init_params(key):
    ks = iter(jax.random.split(key, 8 + NLAYER * 4))
    n = lambda k, shp, s=0.02: jax.random.normal(k, shp, jnp.float32) * s
    params = {
        'w_enc': n(next(ks), (C, DCODE), 1.0),
        'codebook': n(next(ks), (KCODES, DCODE), 1.0),
        'wte': n(next(ks), (VOCAB, D)),
        'wpe': n(next(ks), (BLOCK_SIZE, D)),
        'lnf_g': jnp.ones((1, D), jnp.float32),
        'lnf_b': jnp.zeros((1, D), jnp.float32),
        'w_head': n(next(ks), (D, VOCAB)),
        'blocks': [],
    }
    for _ in range(NLAYER):
        params['blocks'].append({
            'ln1_g': jnp.ones((1, D), jnp.float32),
            'ln1_b': jnp.zeros((1, D), jnp.float32),
            'w_qkv': n(next(ks), (D, 3 * D)),
            'b_qkv': jnp.zeros((1, 3 * D), jnp.float32),
            'w_proj': n(next(ks), (D, D)),
            'b_proj': jnp.zeros((1, D), jnp.float32),
            'ln2_g': jnp.ones((1, D), jnp.float32),
            'ln2_b': jnp.zeros((1, D), jnp.float32),
            'w_fc': n(next(ks), (D, FF)),
            'b_fc': jnp.zeros((1, FF), jnp.float32),
            'w_fc2': n(next(ks), (FF, D)),
            'b_fc2': jnp.zeros((1, D), jnp.float32),
        })
    return params


def prepare_params(p):
    """One-time re-layout: stack per-layer weights on a leading NLAYER axis (streamed by the
    layer grid axis), bf16-ify matmul operands, gather-friendly (VOCAB,1,D) wte layout."""
    bf = jnp.bfloat16
    st = lambda name: jnp.stack([blk[name] for blk in p['blocks']])
    return {
        # mean-over-W folded into the projection: w_enc2[c*W + w, :] = w_enc[c, :] / W
        'w_enc2': jnp.repeat(p['w_enc'], W, axis=0) / float(W),          # (C*W, DCODE)
        'codebook': p['codebook'],                                       # (K, DCODE)
        'cb_sq': jnp.sum(p['codebook'] ** 2, axis=-1, keepdims=True).T,  # (1, K)
        'wte3': p['wte'].reshape(VOCAB, 1, D),                           # row-gather layout
        'wpe3': jnp.tile(p['wpe'][:T], (B, 1)).reshape(BT, 1, D),
        'ln1_g': st('ln1_g'), 'ln1_b': st('ln1_b'),
        'w_qkv': st('w_qkv').astype(bf), 'b_qkv': st('b_qkv'),
        'w_proj': st('w_proj').astype(bf), 'b_proj': st('b_proj'),
        'ln2_g': st('ln2_g'), 'ln2_b': st('ln2_b'),
        'w_fc': st('w_fc').astype(bf), 'b_fc': st('b_fc'),
        'w_fc2': st('w_fc2').astype(bf), 'b_fc2': st('b_fc2'),
        'lnf_g': p['lnf_g'], 'lnf_b': p['lnf_b'],
        'w_head': p['w_head'].astype(bf),
    }


if __name__ == "__main__":
    root = jax.random.PRNGKey(0)
    k_param, k_x, k_rng = jax.random.split(root, 3)
    params = init_params(k_param)
    prep = prepare_params(params)
    x = jax.random.normal(k_x, (B, C, H, W), jnp.float32)   # NCHW like PyTorch

    logits, target = transformer_forward(x, prep, k_rng)
    logits = jax.block_until_ready(logits)
    target = jax.block_until_ready(target)

    assert logits.shape == (B, T, VOCAB) and logits.dtype == jnp.float32
    assert target.shape == (B, T) and target.dtype == jnp.int32
    assert bool(jnp.isfinite(logits).all())
    assert bool((target >= 0).all()) and bool((target < KCODES).all())
    print("KERNEL_OK")
</pallas_src>

<mosaic_0001>
module attributes {stable_mosaic.version = 11 : i64} {
  func.func @encode_mask_kernel(%arg0: memref<16x32xf32, #tpu.memory_space<vmem>>, %arg1: memref<32x32xf32, #tpu.memory_space<vmem>>, %arg2: memref<64x32xf32, #tpu.memory_space<vmem>>, %arg3: memref<1x64xf32, #tpu.memory_space<vmem>>, %arg4: memref<16x1xi32, #tpu.memory_space<vmem>>, %arg5: memref<16x1xi32, #tpu.memory_space<vmem>>, %arg6: memref<16x128xi32, #tpu.memory_space<vmem>>) attributes {dimension_semantics = [], scalar_prefetch = 0 : i64, scratch_operands = 0 : i64, tpu.core_type = #tpu.core_type<tc>} {
    %c0 = arith.constant 0 : index
    %c0_0 = arith.constant 0 : index
    %0 = vector.load %arg0[%c0, %c0_0] : memref<16x32xf32, #tpu.memory_space<vmem>>, vector<16x32xf32>
    %c0_1 = arith.constant 0 : index
    %c0_2 = arith.constant 0 : index
    %1 = vector.load %arg1[%c0_1, %c0_2] : memref<32x32xf32, #tpu.memory_space<vmem>>, vector<32x32xf32>
    %cst = arith.constant dense<0.000000e+00> : vector<16x32xf32>
    %2 = tpu.matmul %0, %1, %cst {dimension_numbers = #tpu.dot_dimension_numbers<[1], [0], [0], [1], [0, 0, 1, 1], [], []>} : vector<16x32xf32>, vector<32x32xf32>, vector<16x32xf32> -> vector<16x32xf32>
    %c0_3 = arith.constant 0 : index
    %c0_4 = arith.constant 0 : index
    %3 = vector.load %arg2[%c0_3, %c0_4] : memref<64x32xf32, #tpu.memory_space<vmem>>, vector<64x32xf32>
    %cst_5 = arith.constant dense<0.000000e+00> : vector<16x64xf32>
    %4 = tpu.matmul %2, %3, %cst_5 {dimension_numbers = #tpu.dot_dimension_numbers<[1], [1], [0], [0], [0, 0, 1, 0], [], []>} : vector<16x32xf32>, vector<64x32xf32>, vector<16x64xf32> -> vector<16x64xf32>
    %c0_6 = arith.constant 0 : index
    %c0_7 = arith.constant 0 : index
    %5 = vector.load %arg3[%c0_6, %c0_7] : memref<1x64xf32, #tpu.memory_space<vmem>>, vector<1x64xf32>
    %cst_8 = arith.constant 2.000000e+00 : f32
    %6 = vector.broadcast %cst_8 : f32 to vector<16x64xf32>
    %7 = arith.mulf %6, %4 : vector<16x64xf32>
    %8 = vector.broadcast %5 : vector<1x64xf32> to vector<16x64xf32>
    %9 = arith.subf %8, %7 : vector<16x64xf32>
    %10 = tpu.iota {dimensions = array<i32: 1>} : vector<16x64xi32>
    %cst_9 = arith.constant dense<0x7F800000> : vector<16xf32>
    %11 = vector.multi_reduction <minimumf>, %9, %cst_9 [1] : vector<16x64xf32> to vector<16xf32>
    %12 = vector.shape_cast %11 : vector<16xf32> to vector<16x1xf32>
    %13 = vector.broadcast %12 : vector<16x1xf32> to vector<16x64xf32>
    %14 = arith.cmpf ole, %9, %13 : vector<16x64xf32>
    %c64_i32 = arith.constant 64 : i32
    %15 = vector.broadcast %c64_i32 : i32 to vector<16x64xi32>
    %16 = arith.select %14, %10, %15 : vector<16x64xi1>, vector<16x64xi32>
    %cst_10 = arith.constant dense<2147483647> : vector<16xi32>
    %17 = vector.multi_reduction <minsi>, %16, %cst_10 [1] : vector<16x64xi32> to vector<16xi32>
    %18 = vector.shape_cast %17 : vector<16xi32> to vector<16x1xi32>
    %c0_11 = arith.constant 0 : index
    %c0_12 = arith.constant 0 : index
    %19 = vector.load %arg4[%c0_11, %c0_12] : memref<16x1xi32, #tpu.memory_space<vmem>>, vector<16x1xi32>
    %c0_i32 = arith.constant 0 : i32
    %20 = vector.broadcast %c0_i32 : i32 to vector<16x1xi32>
    %21 = arith.cmpi ne, %19, %20 : vector<16x1xi32>
    %c0_13 = arith.constant 0 : index
    %c0_14 = arith.constant 0 : index
    %22 = vector.load %arg5[%c0_13, %c0_14] : memref<16x1xi32, #tpu.memory_space<vmem>>, vector<16x1xi32>
    %23 = arith.select %21, %18, %22 : vector<16x1xi1>, vector<16x1xi32>
    %c0_i32_15 = arith.constant 0 : i32
    %24 = vector.broadcast %c0_i32_15 : i32 to vector<1x1xi32>
    %25 = vector.extract_strided_slice %23 {offsets = [0, 0], sizes = [15, 1], strides = [1, 1]} : vector<16x1xi32> to vector<15x1xi32>
    %26 = tpu.concatenate %24, %25 in 0 : vector<1x1xi32>, vector<15x1xi32> -> vector<16x1xi32>
    %27 = tpu.iota {dimensions = array<i32: 0>} : vector<16x1xi32>
    %c7_i32 = arith.constant 7 : i32
    %28 = vector.broadcast %c7_i32 : i32 to vector<16x1xi32>
    %29 = arith.andi %27, %28 : vector<16x1xi32>
    %c0_i32_16 = arith.constant 0 : i32
    %30 = vector.broadcast %c0_i32_16 : i32 to vector<16x1xi32>
    %31 = arith.cmpi eq, %29, %30 : vector<16x1xi32>
    %c0_i32_17 = arith.constant 0 : i32
    %32 = vector.broadcast %c0_i32_17 : i32 to vector<16x1xi32>
    %33 = arith.select %31, %32, %26 : vector<16x1xi1>, vector<16x1xi32>
    %34 = tpu.iota {dimensions = array<i32: 1>} : vector<16x128xi32>
    %c0_i32_18 = arith.constant 0 : i32
    %35 = vector.broadcast %c0_i32_18 : i32 to vector<16x128xi32>
    %36 = arith.cmpi eq, %34, %35 : vector<16x128xi32>
    %c0_i32_19 = arith.constant 0 : i32
    %37 = vector.shape_cast %18 : vector<16x1xi32> to vector<16x1xi32>
    %38 = vector.broadcast %37 : vector<16x1xi32> to vector<16x128xi32>
    %39 = vector.broadcast %c0_i32_19 : i32 to vector<16x128xi32>
    %40 = arith.select %36, %38, %39 : vector<16x128xi1>, vector<16x128xi32>
    %c1_i32 = arith.constant 1 : i32
    %41 = vector.broadcast %c1_i32 : i32 to vector<16x128xi32>
    %42 = arith.cmpi eq, %34, %41 : vector<16x128xi32>
    %c0_i32_20 = arith.constant 0 : i32
    %43 = vector.shape_cast %33 : vector<16x1xi32> to vector<16x1xi32>
    %44 = vector.broadcast %43 : vector<16x1xi32> to vector<16x128xi32>
    %45 = vector.broadcast %c0_i32_20 : i32 to vector<16x128xi32>
    %46 = arith.select %42, %44, %45 : vector<16x128xi1>, vector<16x128xi32>
    %47 = arith.addi %40, %46 : vector<16x128xi32>
    %c0_21 = arith.constant 0 : index
    %c0_22 = arith.constant 0 : index
    %48 = vector.load %arg6[%c0_21, %c0_22] : memref<16x128xi32, #tpu.memory_space<vmem>>, vector<16x128xi32>
    tpu.vector_store %arg6[%c0_21, %c0_22], %47 {strides = array<i32>} : memref<16x128xi32, #tpu.memory_space<vmem>>, vector<16x128xi32>,
    return
  }
}

module attributes {stable_mosaic.version = 11 : i64} {
  func.func @embed_kernel(%arg0: i32, %arg1: memref<16xi32, #tpu.memory_space<smem>>, %arg2: memref<1x1x128xf32, #tpu.memory_space<vmem>>, %arg3: memref<1x1x128xf32, #tpu.memory_space<vmem>>, %arg4: memref<1x1x128xf32, #tpu.memory_space<vmem>>) attributes {dimension_semantics = [#tpu.dimension_semantics<arbitrary>], iteration_bounds = array<i64: 16>, scalar_prefetch = 1 : i64, scratch_operands = 0 : i64, tpu.core_type = #tpu.core_type<tc>, window_params = [{transform_indices = @transform_0, window_bounds = array<i64: 1, 1, 128>}, {transform_indices = @transform_1, window_bounds = array<i64: 1, 1, 128>}, {transform_indices = @transform_2, window_bounds = array<i64: 1, 1, 128>}]} {
    %c0 = arith.constant 0 : index
    %c0_0 = arith.constant 0 : index
    %c0_1 = arith.constant 0 : index
    %0 = vector.load %arg2[%c0, %c0_0, %c0_1] : memref<1x1x128xf32, #tpu.memory_space<vmem>>, vector<1x1x128xf32>
    %1 = vector.shape_cast %0 : vector<1x1x128xf32> to vector<1x128xf32>
    %c0_2 = arith.constant 0 : index
    %c0_3 = arith.constant 0 : index
    %c0_4 = arith.constant 0 : index
    %2 = vector.load %arg3[%c0_2, %c0_3, %c0_4] : memref<1x1x128xf32, #tpu.memory_space<vmem>>, vector<1x1x128xf32>
    %3 = vector.shape_cast %2 : vector<1x1x128xf32> to vector<1x128xf32>
    %4 = arith.addf %1, %3 : vector<1x128xf32>
    %c0_5 = arith.constant 0 : index
    %c0_6 = arith.constant 0 : index
    %c0_7 = arith.constant 0 : index
    %5 = vector.load %arg4[%c0_5, %c0_6, %c0_7] : memref<1x1x128xf32, #tpu.memory_space<vmem>>, vector<1x1x128xf32>
    %6 = vector.shape_cast %5 : vector<1x1x128xf32> to vector<1x128xf32>
    %7 = vector.shape_cast %4 : vector<1x128xf32> to vector<1x1x128xf32>
    tpu.vector_store %arg4[%c0_5, %c0_6, %c0_7], %7 {strides = array<i32>} : memref<1x1x128xf32, #tpu.memory_space<vmem>>, vector<1x1x128xf32>,
    return
  }
  func.func @transform_0(%arg0: i32, %arg1: memref<16xi32, #tpu.memory_space<smem>>) -> (i32, i32, i32) {
    %0 = arith.index_cast %arg0 : i32 to index
    %1 = memref.load %arg1[%0] : memref<16xi32, #tpu.memory_space<smem>>
    %c0_i32 = arith.constant 0 : i32
    %c0_i32_0 = arith.constant 0 : i32
    %c0_i32_1 = arith.constant 0 : i32
    return %1, %c0_i32, %c0_i32_0 : i32, i32, i32
  }
  func.func @transform_1(%arg0: i32, %arg1: memref<16xi32, #tpu.memory_space<smem>>) -> (i32, i32, i32) {
    %c0_i32 = arith.constant 0 : i32
    %c0_i32_0 = arith.constant 0 : i32
    %c0_i32_1 = arith.constant 0 : i32
    return %arg0, %c0_i32, %c0_i32_0 : i32, i32, i32
  }
  func.func @transform_2(%arg0: i32, %arg1: memref<16xi32, #tpu.memory_space<smem>>) -> (i32, i32, i32) {
    %c0_i32 = arith.constant 0 : i32
    %c0_i32_0 = arith.constant 0 : i32
    %c0_i32_1 = arith.constant 0 : i32
    return %arg0, %c0_i32, %c0_i32_0 : i32, i32, i32
  }
}

module attributes {stable_mosaic.version = 11 : i64} {
  func.func @gpt_kernel(%arg0: i32, %arg1: i32, %arg2: memref<8x128xf32, #tpu.memory_space<vmem>>, %arg3: memref<1x1x128xf32, #tpu.memory_space<vmem>>, %arg4: memref<1x1x128xf32, #tpu.memory_space<vmem>>, %arg5: memref<1x128x384xbf16, #tpu.memory_space<vmem>>, %arg6: memref<1x1x384xf32, #tpu.memory_space<vmem>>, %arg7: memref<1x128x128xbf16, #tpu.memory_space<vmem>>, %arg8: memref<1x1x128xf32, #tpu.memory_space<vmem>>, %arg9: memref<1x1x128xf32, #tpu.memory_space<vmem>>, %arg10: memref<1x1x128xf32, #tpu.memory_space<vmem>>, %arg11: memref<1x128x512xbf16, #tpu.memory_space<vmem>>, %arg12: memref<1x1x512xf32, #tpu.memory_space<vmem>>, %arg13: memref<1x512x128xbf16, #tpu.memory_space<vmem>>, %arg14: memref<1x1x128xf32, #tpu.memory_space<vmem>>, %arg15: memref<1x128xf32, #tpu.memory_space<vmem>>, %arg16: memref<1x128xf32, #tpu.memory_space<vmem>>, %arg17: memref<128x128xbf16, #tpu.memory_space<vmem>>, %arg18: memref<8x128xf32, #tpu.memory_space<vmem>>, %arg19: memref<8x128xf32, #tpu.memory_space<vmem>>) attributes {dimension_semantics = [#tpu.dimension_semantics<parallel>, #tpu.dimension_semantics<arbitrary>], iteration_bounds = array<i64: 2, 2>, scalar_prefetch = 0 : i64, scratch_operands = 1 : i64, tpu.core_type = #tpu.core_type<tc>, window_params = [{transform_indices = @transform_0, window_bounds = array<i64: 8, 128>}, {transform_indices = @transform_1, window_bounds = array<i64: 1, 1, 128>}, {transform_indices = @transform_2, window_bounds = array<i64: 1, 1, 128>}, {transform_indices = @transform_3, window_bounds = array<i64: 1, 128, 384>}, {transform_indices = @transform_4, window_bounds = array<i64: 1, 1, 384>}, {transform_indices = @transform_5, window_bounds = array<i64: 1, 128, 128>}, {transform_indices = @transform_6, window_bounds = array<i64: 1, 1, 128>}, {transform_indices = @transform_7, window_bounds = array<i64: 1, 1, 128>}, {transform_indices = @transform_8, window_bounds = array<i64: 1, 1, 128>}, {transform_indices = @transform_9, window_bounds = array<i64: 1, 128, 512>}, {transform_indices = @transform_10, window_bounds = array<i64: 1, 1, 512>}, {transform_indices = @transform_11, window_bounds = array<i64: 1, 512, 128>}, {transform_indices = @transform_12, window_bounds = array<i64: 1, 1, 128>}, {pipeline_mode = #tpu.pipeline_mode<synchronous>, transform_indices = @transform_13, window_bounds = array<i64: 1, 128>}, {pipeline_mode = #tpu.pipeline_mode<synchronous>, transform_indices = @transform_14, window_bounds = array<i64: 1, 128>}, {pipeline_mode = #tpu.pipeline_mode<synchronous>, transform_indices = @transform_15, window_bounds = array<i64: 128, 128>}, {transform_indices = @transform_16, window_bounds = array<i64: 8, 128>}]} {
    %c0_i32 = arith.constant 0 : i32
    %0 = arith.cmpi eq, %arg1, %c0_i32 : i32
    %1 = arith.extui %0 : i1 to i32
    %c0_i32_0 = arith.constant 0 : i32
    %2 = arith.cmpi ne, %1, %c0_i32_0 : i32
    scf.if %2 {
      %c0_82 = arith.constant 0 : index
      %c0_83 = arith.constant 0 : index
      %202 = vector.load %arg2[%c0_82, %c0_83] : memref<8x128xf32, #tpu.memory_space<vmem>>, vector<8x128xf32>
      %c0_84 = arith.constant 0 : index
      %c0_85 = arith.constant 0 : index
      %203 = vector.load %arg19[%c0_84, %c0_85] : memref<8x128xf32, #tpu.memory_space<vmem>>, vector<8x128xf32>
      tpu.vector_store %arg19[%c0_84, %c0_85], %202 {strides = array<i32>} : memref<8x128xf32, #tpu.memory_space<vmem>>, vector<8x128xf32>,
    } else {
    }
    %c0 = arith.constant 0 : index
    %c0_1 = arith.constant 0 : index
    %3 = vector.load %arg19[%c0, %c0_1] : memref<8x128xf32, #tpu.memory_space<vmem>>, vector<8x128xf32>
    %c0_2 = arith.constant 0 : index
    %c0_3 = arith.constant 0 : index
    %c0_4 = arith.constant 0 : index
    %4 = vector.load %arg3[%c0_2, %c0_3, %c0_4] : memref<1x1x128xf32, #tpu.memory_space<vmem>>, vector<1x1x128xf32>
    %5 = vector.shape_cast %4 : vector<1x1x128xf32> to vector<1x128xf32>
    %c0_5 = arith.constant 0 : index
    %c0_6 = arith.constant 0 : index
    %c0_7 = arith.constant 0 : index
    %6 = vector.load %arg4[%c0_5, %c0_6, %c0_7] : memref<1x1x128xf32, #tpu.memory_space<vmem>>, vector<1x1x128xf32>
    %7 = vector.shape_cast %6 : vector<1x1x128xf32> to vector<1x128xf32>
    %cst = arith.constant dense<0.000000e+00> : vector<8xf32>
    %8 = vector.multi_reduction <add>, %3, %cst [1] : vector<8x128xf32> to vector<8xf32>
    %9 = vector.shape_cast %8 : vector<8xf32> to vector<8x1xf32>
    %cst_8 = arith.constant 1.280000e+02 : f32
    %10 = vector.broadcast %cst_8 : f32 to vector<8x1xf32>
    %11 = arith.divf %9, %10 : vector<8x1xf32>
    %12 = vector.broadcast %11 : vector<8x1xf32> to vector<8x128xf32>
    %13 = arith.subf %3, %12 : vector<8x128xf32>
    %14 = arith.mulf %13, %13 : vector<8x128xf32>
    %cst_9 = arith.constant dense<0.000000e+00> : vector<8xf32>
    %15 = vector.multi_reduction <add>, %14, %cst_9 [1] : vector<8x128xf32> to vector<8xf32>
    %16 = vector.shape_cast %15 : vector<8xf32> to vector<8x1xf32>
    %cst_10 = arith.constant 1.280000e+02 : f32
    %17 = vector.broadcast %cst_10 : f32 to vector<8x1xf32>
    %18 = arith.divf %16, %17 : vector<8x1xf32>
    %19 = vector.broadcast %11 : vector<8x1xf32> to vector<8x128xf32>
    %20 = arith.subf %3, %19 : vector<8x128xf32>
    %cst_11 = arith.constant 9.99999974E-6 : f32
    %21 = vector.broadcast %cst_11 : f32 to vector<8x1xf32>
    %22 = arith.addf %18, %21 : vector<8x1xf32>
    %23 = math.rsqrt %22 : vector<8x1xf32>
    %24 = vector.broadcast %23 : vector<8x1xf32> to vector<8x128xf32>
    %25 = arith.mulf %20, %24 : vector<8x128xf32>
    %26 = vector.broadcast %5 : vector<1x128xf32> to vector<8x128xf32>
    %27 = arith.mulf %25, %26 : vector<8x128xf32>
    %28 = vector.broadcast %7 : vector<1x128xf32> to vector<8x128xf32>
    %29 = arith.addf %27, %28 : vector<8x128xf32>
    %30 = arith.truncf %29 : vector<8x128xf32> to vector<8x128xbf16>
    %c0_12 = arith.constant 0 : index
    %c0_13 = arith.constant 0 : index
    %c0_14 = arith.constant 0 : index
    %31 = vector.load %arg5[%c0_12, %c0_13, %c0_14] : memref<1x128x384xbf16, #tpu.memory_space<vmem>>, vector<1x128x384xbf16>
    %32 = vector.shape_cast %31 : vector<1x128x384xbf16> to vector<128x384xbf16>
    %cst_15 = arith.constant dense<0.000000e+00> : vector<8x384xf32>
    %33 = tpu.matmul %30, %32, %cst_15 {dimension_numbers = #tpu.dot_dimension_numbers<[1], [0], [0], [1], [0, 0, 1, 1], [], []>} : vector<8x128xbf16>, vector<128x384xbf16>, vector<8x384xf32> -> vector<8x384xf32>
    %c0_16 = arith.constant 0 : index
    %c0_17 = arith.constant 0 : index
    %c0_18 = arith.constant 0 : index
    %34 = vector.load %arg6[%c0_16, %c0_17, %c0_18] : memref<1x1x384xf32, #tpu.memory_space<vmem>>, vector<1x1x384xf32>
    %35 = vector.shape_cast %34 : vector<1x1x384xf32> to vector<1x384xf32>
    %36 = vector.broadcast %35 : vector<1x384xf32> to vector<8x384xf32>
    %37 = arith.addf %33, %36 : vector<8x384xf32>
    %38 = vector.extract_strided_slice %37 {offsets = [0, 0], sizes = [8, 128], strides = [1, 1]} : vector<8x384xf32> to vector<8x128xf32>
    %39 = vector.extract_strided_slice %37 {offsets = [0, 128], sizes = [8, 128], strides = [1, 1]} : vector<8x384xf32> to vector<8x128xf32>
    %40 = vector.extract_strided_slice %37 {offsets = [0, 256], sizes = [8, 128], strides = [1, 1]} : vector<8x384xf32> to vector<8x128xf32>
    %41 = tpu.iota {dimensions = array<i32: 0>} : vector<8x8xi32>
    %42 = tpu.iota {dimensions = array<i32: 1>} : vector<8x8xi32>
    %43 = arith.cmpi sge, %41, %42 : vector<8x8xi32>
    %44 = vector.extract_strided_slice %38 {offsets = [0, 0], sizes = [8, 32], strides = [1, 1]} : vector<8x128xf32> to vector<8x32xf32>
    %45 = arith.truncf %44 : vector<8x32xf32> to vector<8x32xbf16>
    %46 = vector.extract_strided_slice %39 {offsets = [0, 0], sizes = [8, 32], strides = [1, 1]} : vector<8x128xf32> to vector<8x32xf32>
    %47 = arith.truncf %46 : vector<8x32xf32> to vector<8x32xbf16>
    %cst_19 = arith.constant dense<0.000000e+00> : vector<8x8xf32>
    %48 = tpu.matmul %45, %47, %cst_19 {dimension_numbers = #tpu.dot_dimension_numbers<[1], [1], [0], [0], [0, 0, 1, 0], [], []>} : vector<8x32xbf16>, vector<8x32xbf16>, vector<8x8xf32> -> vector<8x8xf32>
    %cst_20 = arith.constant 0.176776692 : f32
    %49 = vector.broadcast %cst_20 : f32 to vector<8x8xf32>
    %50 = arith.mulf %48, %49 : vector<8x8xf32>
    %cst_21 = arith.constant -1.000000e+30 : f32
    %51 = vector.broadcast %cst_21 : f32 to vector<8x8xf32>
    %52 = arith.select %43, %50, %51 : vector<8x8xi1>, vector<8x8xf32>
    %cst_22 = arith.constant dense<0xFF800000> : vector<8xf32>
    %53 = vector.multi_reduction <maximumf>, %52, %cst_22 [1] : vector<8x8xf32> to vector<8xf32>
    %54 = vector.shape_cast %53 : vector<8xf32> to vector<8x1xf32>
    %55 = vector.broadcast %54 : vector<8x1xf32> to vector<8x8xf32>
    %56 = arith.subf %52, %55 : vector<8x8xf32>
    %57 = math.exp %56 : vector<8x8xf32>
    %cst_23 = arith.constant dense<0.000000e+00> : vector<8xf32>
    %58 = vector.multi_reduction <add>, %57, %cst_23 [1] : vector<8x8xf32> to vector<8xf32>
    %59 = vector.shape_cast %58 : vector<8xf32> to vector<8x1xf32>
    %60 = vector.broadcast %59 : vector<8x1xf32> to vector<8x8xf32>
    %61 = arith.divf %57, %60 : vector<8x8xf32>
    %62 = arith.truncf %61 : vector<8x8xf32> to vector<8x8xbf16>
    %63 = vector.extract_strided_slice %40 {offsets = [0, 0], sizes = [8, 32], strides = [1, 1]} : vector<8x128xf32> to vector<8x32xf32>
    %64 = arith.truncf %63 : vector<8x32xf32> to vector<8x32xbf16>
    %cst_24 = arith.constant dense<0.000000e+00> : vector<8x32xf32>
    %65 = tpu.matmul %62, %64, %cst_24 {dimension_numbers = #tpu.dot_dimension_numbers<[1], [0], [0], [1], [0, 0, 1, 1], [], []>} : vector<8x8xbf16>, vector<8x32xbf16>, vector<8x32xf32> -> vector<8x32xf32>
    %66 = vector.extract_strided_slice %38 {offsets = [0, 32], sizes = [8, 32], strides = [1, 1]} : vector<8x128xf32> to vector<8x32xf32>
    %67 = arith.truncf %66 : vector<8x32xf32> to vector<8x32xbf16>
    %68 = vector.extract_strided_slice %39 {offsets = [0, 32], sizes = [8, 32], strides = [1, 1]} : vector<8x128xf32> to vector<8x32xf32>
    %69 = arith.truncf %68 : vector<8x32xf32> to vector<8x32xbf16>
    %cst_25 = arith.constant dense<0.000000e+00> : vector<8x8xf32>
    %70 = tpu.matmul %67, %69, %cst_25 {dimension_numbers = #tpu.dot_dimension_numbers<[1], [1], [0], [0], [0, 0, 1, 0], [], []>} : vector<8x32xbf16>, vector<8x32xbf16>, vector<8x8xf32> -> vector<8x8xf32>
    %cst_26 = arith.constant 0.176776692 : f32
    %71 = vector.broadcast %cst_26 : f32 to vector<8x8xf32>
    %72 = arith.mulf %70, %71 : vector<8x8xf32>
    %cst_27 = arith.constant -1.000000e+30 : f32
    %73 = vector.broadcast %cst_27 : f32 to vector<8x8xf32>
    %74 = arith.select %43, %72, %73 : vector<8x8xi1>, vector<8x8xf32>
    %cst_28 = arith.constant dense<0xFF800000> : vector<8xf32>
    %75 = vector.multi_reduction <maximumf>, %74, %cst_28 [1] : vector<8x8xf32> to vector<8xf32>
    %76 = vector.shape_cast %75 : vector<8xf32> to vector<8x1xf32>
    %77 = vector.broadcast %76 : vector<8x1xf32> to vector<8x8xf32>
    %78 = arith.subf %74, %77 : vector<8x8xf32>
    %79 = math.exp %78 : vector<8x8xf32>
    %cst_29 = arith.constant dense<0.000000e+00> : vector<8xf32>
    %80 = vector.multi_reduction <add>, %79, %cst_29 [1] : vector<8x8xf32> to vector<8xf32>
    %81 = vector.shape_cast %80 : vector<8xf32> to vector<8x1xf32>
    %82 = vector.broadcast %81 : vector<8x1xf32> to vector<8x8xf32>
    %83 = arith.divf %79, %82 : vector<8x8xf32>
    %84 = arith.truncf %83 : vector<8x8xf32> to vector<8x8xbf16>
    %85 = vector.extract_strided_slice %40 {offsets = [0, 32], sizes = [8, 32], strides = [1, 1]} : vector<8x128xf32> to vector<8x32xf32>
    %86 = arith.truncf %85 : vector<8x32xf32> to vector<8x32xbf16>
    %cst_30 = arith.constant dense<0.000000e+00> : vector<8x32xf32>
    %87 = tpu.matmul %84, %86, %cst_30 {dimension_numbers = #tpu.dot_dimension_numbers<[1], [0], [0], [1], [0, 0, 1, 1], [], []>} : vector<8x8xbf16>, vector<8x32xbf16>, vector<8x32xf32> -> vector<8x32xf32>
    %88 = vector.extract_strided_slice %38 {offsets = [0, 64], sizes = [8, 32], strides = [1, 1]} : vector<8x128xf32> to vector<8x32xf32>
    %89 = arith.truncf %88 : vector<8x32xf32> to vector<8x32xbf16>
    %90 = vector.extract_strided_slice %39 {offsets = [0, 64], sizes = [8, 32], strides = [1, 1]} : vector<8x128xf32> to vector<8x32xf32>
    %91 = arith.truncf %90 : vector<8x32xf32> to vector<8x32xbf16>
    %cst_31 = arith.constant dense<0.000000e+00> : vector<8x8xf32>
    %92 = tpu.matmul %89, %91, %cst_31 {dimension_numbers = #tpu.dot_dimension_numbers<[1], [1], [0], [0], [0, 0, 1, 0], [], []>} : vector<8x32xbf16>, vector<8x32xbf16>, vector<8x8xf32> -> vector<8x8xf32>
    %cst_32 = arith.constant 0.176776692 : f32
    %93 = vector.broadcast %cst_32 : f32 to vector<8x8xf32>
    %94 = arith.mulf %92, %93 : vector<8x8xf32>
    %cst_33 = arith.constant -1.000000e+30 : f32
    %95 = vector.broadcast %cst_33 : f32 to vector<8x8xf32>
    %96 = arith.select %43, %94, %95 : vector<8x8xi1>, vector<8x8xf32>
    %cst_34 = arith.constant dense<0xFF800000> : vector<8xf32>
    %97 = vector.multi_reduction <maximumf>, %96, %cst_34 [1] : vector<8x8xf32> to vector<8xf32>
    %98 = vector.shape_cast %97 : vector<8xf32> to vector<8x1xf32>
    %99 = vector.broadcast %98 : vector<8x1xf32> to vector<8x8xf32>
    %100 = arith.subf %96, %99 : vector<8x8xf32>
    %101 = math.exp %100 : vector<8x8xf32>
    %cst_35 = arith.constant dense<0.000000e+00> : vector<8xf32>
    %102 = vector.multi_reduction <add>, %101, %cst_35 [1] : vector<8x8xf32> to vector<8xf32>
    %103 = vector.shape_cast %102 : vector<8xf32> to vector<8x1xf32>
    %104 = vector.broadcast %103 : vector<8x1xf32> to vector<8x8xf32>
    %105 = arith.divf %101, %104 : vector<8x8xf32>
    %106 = arith.truncf %105 : vector<8x8xf32> to vector<8x8xbf16>
    %107 = vector.extract_strided_slice %40 {offsets = [0, 64], sizes = [8, 32], strides = [1, 1]} : vector<8x128xf32> to vector<8x32xf32>
    %108 = arith.truncf %107 : vector<8x32xf32> to vector<8x32xbf16>
    %cst_36 = arith.constant dense<0.000000e+00> : vector<8x32xf32>
    %109 = tpu.matmul %106, %108, %cst_36 {dimension_numbers = #tpu.dot_dimension_numbers<[1], [0], [0], [1], [0, 0, 1, 1], [], []>} : vector<8x8xbf16>, vector<8x32xbf16>, vector<8x32xf32> -> vector<8x32xf32>
    %110 = vector.extract_strided_slice %38 {offsets = [0, 96], sizes = [8, 32], strides = [1, 1]} : vector<8x128xf32> to vector<8x32xf32>
    %111 = arith.truncf %110 : vector<8x32xf32> to vector<8x32xbf16>
    %112 = vector.extract_strided_slice %39 {offsets = [0, 96], sizes = [8, 32], strides = [1, 1]} : vector<8x128xf32> to vector<8x32xf32>
    %113 = arith.truncf %112 : vector<8x32xf32> to vector<8x32xbf16>
    %cst_37 = arith.constant dense<0.000000e+00> : vector<8x8xf32>
    %114 = tpu.matmul %111, %113, %cst_37 {dimension_numbers = #tpu.dot_dimension_numbers<[1], [1], [0], [0], [0, 0, 1, 0], [], []>} : vector<8x32xbf16>, vector<8x32xbf16>, vector<8x8xf32> -> vector<8x8xf32>
    %cst_38 = arith.constant 0.176776692 : f32
    %115 = vector.broadcast %cst_38 : f32 to vector<8x8xf32>
    %116 = arith.mulf %114, %115 : vector<8x8xf32>
    %cst_39 = arith.constant -1.000000e+30 : f32
    %117 = vector.broadcast %cst_39 : f32 to vector<8x8xf32>
    %118 = arith.select %43, %116, %117 : vector<8x8xi1>, vector<8x8xf32>
    %cst_40 = arith.constant dense<0xFF800000> : vector<8xf32>
    %119 = vector.multi_reduction <maximumf>, %118, %cst_40 [1] : vector<8x8xf32> to vector<8xf32>
    %120 = vector.shape_cast %119 : vector<8xf32> to vector<8x1xf32>
    %121 = vector.broadcast %120 : vector<8x1xf32> to vector<8x8xf32>
    %122 = arith.subf %118, %121 : vector<8x8xf32>
    %123 = math.exp %122 : vector<8x8xf32>
    %cst_41 = arith.constant dense<0.000000e+00> : vector<8xf32>
    %124 = vector.multi_reduction <add>, %123, %cst_41 [1] : vector<8x8xf32> to vector<8xf32>
    %125 = vector.shape_cast %124 : vector<8xf32> to vector<8x1xf32>
    %126 = vector.broadcast %125 : vector<8x1xf32> to vector<8x8xf32>
    %127 = arith.divf %123, %126 : vector<8x8xf32>
    %128 = arith.truncf %127 : vector<8x8xf32> to vector<8x8xbf16>
    %129 = vector.extract_strided_slice %40 {offsets = [0, 96], sizes = [8, 32], strides = [1, 1]} : vector<8x128xf32> to vector<8x32xf32>
    %130 = arith.truncf %129 : vector<8x32xf32> to vector<8x32xbf16>
    %cst_42 = arith.constant dense<0.000000e+00> : vector<8x32xf32>
    %131 = tpu.matmul %128, %130, %cst_42 {dimension_numbers = #tpu.dot_dimension_numbers<[1], [0], [0], [1], [0, 0, 1, 1], [], []>} : vector<8x8xbf16>, vector<8x32xbf16>, vector<8x32xf32> -> vector<8x32xf32>
    %132 = tpu.concatenate %65, %87, %109, %131 in 1 : vector<8x32xf32>, vector<8x32xf32>, vector<8x32xf32>, vector<8x32xf32> -> vector<8x128xf32>
    %133 = arith.truncf %132 : vector<8x128xf32> to vector<8x128xbf16>
    %c0_43 = arith.constant 0 : index
    %c0_44 = arith.constant 0 : index
    %c0_45 = arith.constant 0 : index
    %134 = vector.load %arg7[%c0_43, %c0_44, %c0_45] : memref<1x128x128xbf16, #tpu.memory_space<vmem>>, vector<1x128x128xbf16>
    %135 = vector.shape_cast %134 : vector<1x128x128xbf16> to vector<128x128xbf16>
    %cst_46 = arith.constant dense<0.000000e+00> : vector<8x128xf32>
    %136 = tpu.matmul %133, %135, %cst_46 {dimension_numbers = #tpu.dot_dimension_numbers<[1], [0], [0], [1], [0, 0, 1, 1], [], []>} : vector<8x128xbf16>, vector<128x128xbf16>, vector<8x128xf32> -> vector<8x128xf32>
    %137 = arith.addf %3, %136 : vector<8x128xf32>
    %c0_47 = arith.constant 0 : index
    %c0_48 = arith.constant 0 : index
    %c0_49 = arith.constant 0 : index
    %138 = vector.load %arg8[%c0_47, %c0_48, %c0_49] : memref<1x1x128xf32, #tpu.memory_space<vmem>>, vector<1x1x128xf32>
    %139 = vector.shape_cast %138 : vector<1x1x128xf32> to vector<1x128xf32>
    %140 = vector.broadcast %139 : vector<1x128xf32> to vector<8x128xf32>
    %141 = arith.addf %137, %140 : vector<8x128xf32>
    %c0_50 = arith.constant 0 : index
    %c0_51 = arith.constant 0 : index
    %c0_52 = arith.constant 0 : index
    %142 = vector.load %arg9[%c0_50, %c0_51, %c0_52] : memref<1x1x128xf32, #tpu.memory_space<vmem>>, vector<1x1x128xf32>
    %143 = vector.shape_cast %142 : vector<1x1x128xf32> to vector<1x128xf32>
    %c0_53 = arith.constant 0 : index
    %c0_54 = arith.constant 0 : index
    %c0_55 = arith.constant 0 : index
    %144 = vector.load %arg10[%c0_53, %c0_54, %c0_55] : memref<1x1x128xf32, #tpu.memory_space<vmem>>, vector<1x1x128xf32>
    %145 = vector.shape_cast %144 : vector<1x1x128xf32> to vector<1x128xf32>
    %cst_56 = arith.constant dense<0.000000e+00> : vector<8xf32>
    %146 = vector.multi_reduction <add>, %141, %cst_56 [1] : vector<8x128xf32> to vector<8xf32>
    %147 = vector.shape_cast %146 : vector<8xf32> to vector<8x1xf32>
    %cst_57 = arith.constant 1.280000e+02 : f32
    %148 = vector.broadcast %cst_57 : f32 to vector<8x1xf32>
    %149 = arith.divf %147, %148 : vector<8x1xf32>
    %150 = vector.broadcast %149 : vector<8x1xf32> to vector<8x128xf32>
    %151 = arith.subf %141, %150 : vector<8x128xf32>
    %152 = arith.mulf %151, %151 : vector<8x128xf32>
    %cst_58 = arith.constant dense<0.000000e+00> : vector<8xf32>
    %153 = vector.multi_reduction <add>, %152, %cst_58 [1] : vector<8x128xf32> to vector<8xf32>
    %154 = vector.shape_cast %153 : vector<8xf32> to vector<8x1xf32>
    %cst_59 = arith.constant 1.280000e+02 : f32
    %155 = vector.broadcast %cst_59 : f32 to vector<8x1xf32>
    %156 = arith.divf %154, %155 : vector<8x1xf32>
    %157 = vector.broadcast %149 : vector<8x1xf32> to vector<8x128xf32>
    %158 = arith.subf %141, %157 : vector<8x128xf32>
    %cst_60 = arith.constant 9.99999974E-6 : f32
    %159 = vector.broadcast %cst_60 : f32 to vector<8x1xf32>
    %160 = arith.addf %156, %159 : vector<8x1xf32>
    %161 = math.rsqrt %160 : vector<8x1xf32>
    %162 = vector.broadcast %161 : vector<8x1xf32> to vector<8x128xf32>
    %163 = arith.mulf %158, %162 : vector<8x128xf32>
    %164 = vector.broadcast %143 : vector<1x128xf32> to vector<8x128xf32>
    %165 = arith.mulf %163, %164 : vector<8x128xf32>
    %166 = vector.broadcast %145 : vector<1x128xf32> to vector<8x128xf32>
    %167 = arith.addf %165, %166 : vector<8x128xf32>
    %168 = arith.truncf %167 : vector<8x128xf32> to vector<8x128xbf16>
    %c0_61 = arith.constant 0 : index
    %c0_62 = arith.constant 0 : index
    %c0_63 = arith.constant 0 : index
    %169 = vector.load %arg11[%c0_61, %c0_62, %c0_63] : memref<1x128x512xbf16, #tpu.memory_space<vmem>>, vector<1x128x512xbf16>
    %170 = vector.shape_cast %169 : vector<1x128x512xbf16> to vector<128x512xbf16>
    %cst_64 = arith.constant dense<0.000000e+00> : vector<8x512xf32>
    %171 = tpu.matmul %168, %170, %cst_64 {dimension_numbers = #tpu.dot_dimension_numbers<[1], [0], [0], [1], [0, 0, 1, 1], [], []>} : vector<8x128xbf16>, vector<128x512xbf16>, vector<8x512xf32> -> vector<8x512xf32>
    %c0_65 = arith.constant 0 : index
    %c0_66 = arith.constant 0 : index
    %c0_67 = arith.constant 0 : index
    %172 = vector.load %arg12[%c0_65, %c0_66, %c0_67] : memref<1x1x512xf32, #tpu.memory_space<vmem>>, vector<1x1x512xf32>
    %173 = vector.shape_cast %172 : vector<1x1x512xf32> to vector<1x512xf32>
    %174 = vector.broadcast %173 : vector<1x512xf32> to vector<8x512xf32>
    %175 = arith.addf %171, %174 : vector<8x512xf32>
    %176 = arith.mulf %175, %175 : vector<8x512xf32>
    %177 = arith.mulf %175, %176 : vector<8x512xf32>
    %cst_68 = arith.constant 4.471500e-02 : f32
    %178 = vector.broadcast %cst_68 : f32 to vector<8x512xf32>
    %179 = arith.mulf %178, %177 : vector<8x512xf32>
    %180 = arith.addf %175, %179 : vector<8x512xf32>
    %cst_69 = arith.constant 0.797884583 : f32
    %181 = vector.broadcast %cst_69 : f32 to vector<8x512xf32>
    %182 = arith.mulf %181, %180 : vector<8x512xf32>
    %183 = math.tanh %182 : vector<8x512xf32>
    %cst_70 = arith.constant 1.000000e+00 : f32
    %184 = vector.broadcast %cst_70 : f32 to vector<8x512xf32>
    %185 = arith.addf %184, %183 : vector<8x512xf32>
    %cst_71 = arith.constant 5.000000e-01 : f32
    %186 = vector.broadcast %cst_71 : f32 to vector<8x512xf32>
    %187 = arith.mulf %186, %185 : vector<8x512xf32>
    %188 = arith.mulf %175, %187 : vector<8x512xf32>
    %189 = arith.truncf %188 : vector<8x512xf32> to vector<8x512xbf16>
    %c0_72 = arith.constant 0 : index
    %c0_73 = arith.constant 0 : index
    %c0_74 = arith.constant 0 : index
    %190 = vector.load %arg13[%c0_72, %c0_73, %c0_74] : memref<1x512x128xbf16, #tpu.memory_space<vmem>>, vector<1x512x128xbf16>
    %191 = vector.shape_cast %190 : vector<1x512x128xbf16> to vector<512x128xbf16>
    %cst_75 = arith.constant dense<0.000000e+00> : vector<8x128xf32>
    %192 = tpu.matmul %189, %191, %cst_75 {dimension_numbers = #tpu.dot_dimension_numbers<[1], [0], [0], [1], [0, 0, 1, 1], [], []>} : vector<8x512xbf16>, vector<512x128xbf16>, vector<8x128xf32> -> vector<8x128xf32>
    %193 = arith.addf %141, %192 : vector<8x128xf32>
    %c0_76 = arith.constant 0 : index
    %c0_77 = arith.constant 0 : index
    %c0_78 = arith.constant 0 : index
    %194 = vector.load %arg14[%c0_76, %c0_77, %c0_78] : memref<1x1x128xf32, #tpu.memory_space<vmem>>, vector<1x1x128xf32>
    %195 = vector.shape_cast %194 : vector<1x1x128xf32> to vector<1x128xf32>
    %196 = vector.broadcast %195 : vector<1x128xf32> to vector<8x128xf32>
    %197 = arith.addf %193, %196 : vector<8x128xf32>
    %c0_79 = arith.constant 0 : index
    %c0_80 = arith.constant 0 : index
    %198 = vector.load %arg19[%c0_79, %c0_80] : memref<8x128xf32, #tpu.memory_space<vmem>>, vector<8x128xf32>
    tpu.vector_store %arg19[%c0_79, %c0_80], %197 {strides = array<i32>} : memref<8x128xf32, #tpu.memory_space<vmem>>, vector<8x128xf32>,
    %c1_i32 = arith.constant 1 : i32
    %199 = arith.cmpi eq, %arg1, %c1_i32 : i32
    %200 = arith.extui %199 : i1 to i32
    %c0_i32_81 = arith.constant 0 : i32
    %201 = arith.cmpi ne, %200, %c0_i32_81 : i32
    scf.if %201 {
      %c0_82 = arith.constant 0 : index
      %c0_83 = arith.constant 0 : index
      %202 = vector.load %arg15[%c0_82, %c0_83] : memref<1x128xf32, #tpu.memory_space<vmem>>, vector<1x128xf32>
      %c0_84 = arith.constant 0 : index
      %c0_85 = arith.constant 0 : index
      %203 = vector.load %arg16[%c0_84, %c0_85] : memref<1x128xf32, #tpu.memory_space<vmem>>, vector<1x128xf32>
      %cst_86 = arith.constant dense<0.000000e+00> : vector<8xf32>
      %204 = vector.multi_reduction <add>, %197, %cst_86 [1] : vector<8x128xf32> to vector<8xf32>
      %205 = vector.shape_cast %204 : vector<8xf32> to vector<8x1xf32>
      %cst_87 = arith.constant 1.280000e+02 : f32
      %206 = vector.broadcast %cst_87 : f32 to vector<8x1xf32>
      %207 = arith.divf %205, %206 : vector<8x1xf32>
      %208 = vector.broadcast %207 : vector<8x1xf32> to vector<8x128xf32>
      %209 = arith.subf %197, %208 : vector<8x128xf32>
      %210 = arith.mulf %209, %209 : vector<8x128xf32>
      %cst_88 = arith.constant dense<0.000000e+00> : vector<8xf32>
      %211 = vector.multi_reduction <add>, %210, %cst_88 [1] : vector<8x128xf32> to vector<8xf32>
      %212 = vector.shape_cast %211 : vector<8xf32> to vector<8x1xf32>
      %cst_89 = arith.constant 1.280000e+02 : f32
      %213 = vector.broadcast %cst_89 : f32 to vector<8x1xf32>
      %214 = arith.divf %212, %213 : vector<8x1xf32>
      %215 = vector.broadcast %207 : vector<8x1xf32> to vector<8x128xf32>
      %216 = arith.subf %197, %215 : vector<8x128xf32>
      %cst_90 = arith.constant 9.99999974E-6 : f32
      %217 = vector.broadcast %cst_90 : f32 to vector<8x1xf32>
      %218 = arith.addf %214, %217 : vector<8x1xf32>
      %219 = math.rsqrt %218 : vector<8x1xf32>
      %220 = vector.broadcast %219 : vector<8x1xf32> to vector<8x128xf32>
      %221 = arith.mulf %216, %220 : vector<8x128xf32>
      %222 = vector.broadcast %202 : vector<1x128xf32> to vector<8x128xf32>
      %223 = arith.mulf %221, %222 : vector<8x128xf32>
      %224 = vector.broadcast %203 : vector<1x128xf32> to vector<8x128xf32>
      %225 = arith.addf %223, %224 : vector<8x128xf32>
      %226 = arith.truncf %225 : vector<8x128xf32> to vector<8x128xbf16>
      %c0_91 = arith.constant 0 : index
      %c0_92 = arith.constant 0 : index
      %227 = vector.load %arg17[%c0_91, %c0_92] : memref<128x128xbf16, #tpu.memory_space<vmem>>, vector<128x128xbf16>
      %cst_93 = arith.constant dense<0.000000e+00> : vector<8x128xf32>
      %228 = tpu.matmul %226, %227, %cst_93 {dimension_numbers = #tpu.dot_dimension_numbers<[1], [0], [0], [1], [0, 0, 1, 1], [], []>} : vector<8x128xbf16>, vector<128x128xbf16>, vector<8x128xf32> -> vector<8x128xf32>
      %c0_94 = arith.constant 0 : index
      %c0_95 = arith.constant 0 : index
      %229 = vector.load %arg18[%c0_94, %c0_95] : memref<8x128xf32, #tpu.memory_space<vmem>>, vector<8x128xf32>
      tpu.vector_store %arg18[%c0_94, %c0_95], %228 {strides = array<i32>} : memref<8x128xf32, #tpu.memory_space<vmem>>, vector<8x128xf32>,
    } else {
    }
    return
  }
  func.func @transform_0(%arg0: i32, %arg1: i32) -> (i32, i32) {
    %c0_i32 = arith.constant 0 : i32
    %c0_i32_0 = arith.constant 0 : i32
    return %arg0, %c0_i32 : i32, i32
  }
  func.func @transform_1(%arg0: i32, %arg1: i32) -> (i32, i32, i32) {
    %c0_i32 = arith.constant 0 : i32
    %c0_i32_0 = arith.constant 0 : i32
    %c0_i32_1 = arith.constant 0 : i32
    return %arg1, %c0_i32, %c0_i32_0 : i32, i32, i32
  }
  func.func @transform_2(%arg0: i32, %arg1: i32) -> (i32, i32, i32) {
    %c0_i32 = arith.constant 0 : i32
    %c0_i32_0 = arith.constant 0 : i32
    %c0_i32_1 = arith.constant 0 : i32
    return %arg1, %c0_i32, %c0_i32_0 : i32, i32, i32
  }
  func.func @transform_3(%arg0: i32, %arg1: i32) -> (i32, i32, i32) {
    %c0_i32 = arith.constant 0 : i32
    %c0_i32_0 = arith.constant 0 : i32
    %c0_i32_1 = arith.constant 0 : i32
    return %arg1, %c0_i32, %c0_i32_0 : i32, i32, i32
  }
  func.func @transform_4(%arg0: i32, %arg1: i32) -> (i32, i32, i32) {
    %c0_i32 = arith.constant 0 : i32
    %c0_i32_0 = arith.constant 0 : i32
    %c0_i32_1 = arith.constant 0 : i32
    return %arg1, %c0_i32, %c0_i32_0 : i32, i32, i32
  }
  func.func @transform_5(%arg0: i32, %arg1: i32) -> (i32, i32, i32) {
    %c0_i32 = arith.constant 0 : i32
    %c0_i32_0 = arith.constant 0 : i32
    %c0_i32_1 = arith.constant 0 : i32
    return %arg1, %c0_i32, %c0_i32_0 : i32, i32, i32
  }
  func.func @transform_6(%arg0: i32, %arg1: i32) -> (i32, i32, i32) {
    %c0_i32 = arith.constant 0 : i32
    %c0_i32_0 = arith.constant 0 : i32
    %c0_i32_1 = arith.constant 0 : i32
    return %arg1, %c0_i32, %c0_i32_0 : i32, i32, i32
  }
  func.func @transform_7(%arg0: i32, %arg1: i32) -> (i32, i32, i32) {
    %c0_i32 = arith.constant 0 : i32
    %c0_i32_0 = arith.constant 0 : i32
    %c0_i32_1 = arith.constant 0 : i32
    return %arg1, %c0_i32, %c0_i32_0 : i32, i32, i32
  }
  func.func @transform_8(%arg0: i32, %arg1: i32) -> (i32, i32, i32) {
    %c0_i32 = arith.constant 0 : i32
    %c0_i32_0 = arith.constant 0 : i32
    %c0_i32_1 = arith.constant 0 : i32
    return %arg1, %c0_i32, %c0_i32_0 : i32, i32, i32
  }
  func.func @transform_9(%arg0: i32, %arg1: i32) -> (i32, i32, i32) {
    %c0_i32 = arith.constant 0 : i32
    %c0_i32_0 = arith.constant 0 : i32
    %c0_i32_1 = arith.constant 0 : i32
    return %arg1, %c0_i32, %c0_i32_0 : i32, i32, i32
  }
  func.func @transform_10(%arg0: i32, %arg1: i32) -> (i32, i32, i32) {
    %c0_i32 = arith.constant 0 : i32
    %c0_i32_0 = arith.constant 0 : i32
    %c0_i32_1 = arith.constant 0 : i32
    return %arg1, %c0_i32, %c0_i32_0 : i32, i32, i32
  }
  func.func @transform_11(%arg0: i32, %arg1: i32) -> (i32, i32, i32) {
    %c0_i32 = arith.constant 0 : i32
    %c0_i32_0 = arith.constant 0 : i32
    %c0_i32_1 = arith.constant 0 : i32
    return %arg1, %c0_i32, %c0_i32_0 : i32, i32, i32
  }
  func.func @transform_12(%arg0: i32, %arg1: i32) -> (i32, i32, i32) {
    %c0_i32 = arith.constant 0 : i32
    %c0_i32_0 = arith.constant 0 : i32
    %c0_i32_1 = arith.constant 0 : i32
    return %arg1, %c0_i32, %c0_i32_0 : i32, i32, i32
  }
  func.func @transform_13(%arg0: i32, %arg1: i32) -> (i32, i32) {
    %c0_i32 = arith.constant 0 : i32
    %c0_i32_0 = arith.constant 0 : i32
    %c0_i32_1 = arith.constant 0 : i32
    return %c0_i32, %c0_i32_0 : i32, i32
  }
  func.func @transform_14(%arg0: i32, %arg1: i32) -> (i32, i32) {
    %c0_i32 = arith.constant 0 : i32
    %c0_i32_0 = arith.constant 0 : i32
    %c0_i32_1 = arith.constant 0 : i32
    return %c0_i32, %c0_i32_0 : i32, i32
  }
  func.func @transform_15(%arg0: i32, %arg1: i32) -> (i32, i32) {
    %c0_i32 = arith.constant 0 : i32
    %c0_i32_0 = arith.constant 0 : i32
    %c0_i32_1 = arith.constant 0 : i32
    return %c0_i32, %c0_i32_0 : i32, i32
  }
  func.func @transform_16(%arg0: i32, %arg1: i32) -> (i32, i32) {
    %c0_i32 = arith.constant 0 : i32
    %c0_i32_0 = arith.constant 0 : i32
    return %arg0, %c0_i32 : i32, i32
  }
}

</mosaic_0001>

<bundles_post_ra>
// kernel: squeeze.27
= control target key start
LH: loop header
LB: loop body
LE: loop exit
PB: predicated region body
PF: predicated region fallthrough
CT: control target
= control target key end

     0   :  { %s77_s0 = inlined_call_operand.vmem [shape: s32[16], index: 0, kind: input, shape index: {}]   ;;  %s78_s1 = inlined_call_operand.hbm [shape: s32[2,8], index: 1, kind: output, shape index: {}]  }
   0x1   :  { %v6_v0 = vld [vmem:[%s77_s0] sm:$0x1] }
   0x2   :  { %2 = vsyncpa [#allocation1], 0  ;;  %7 = vst [vmem:[#allocation3] sm:$0x1] %v6_v0  ;;  %vm9_vm0 = vcmask 64512   ;;  %s59_s0 = smov 120  }
   0x3   :  { %s60_s8 = smov [#allocation0]  }
   0x4   :  { %s29_s9 = sshll.u32 %s60_s8, 4  ;;  %s30_s9 = int_to_ptr.vmem [resolvable:$true] %s29_s9 }
   0x5   :  { %s37_s10 = scalar_lea.vmem %s30_s9, 32  ;;  %p42_p1 = scmp.lt.s32.totalorder %s30_s9, %s30_s9 }
   0x6   :  { %p38_p0 = scmp.ne.s32.totalorder %s30_s9, %s37_s10  ;;  %p43_p2 = scmp.lt.s32.totalorder %s37_s10, %s37_s10 }
   0x8   :  { %p44_p3 = por %p43_p2, %p42_p1 }
   0x9   :  { %v11_v1 = vld [vmem:[#allocation3] sm:$0x1]  }
   0xa   :  { %v8_v2 = vld [vmem:[#allocation3] sm:$0x1]   ;;  %12 = vrot.lane.b32.xlu0 %v11_v1, %s59_s0  ;;  %p45_p4 = pnand %p44_p3, %p38_p0 }
   0xb   :  { %10 = vst.msk [vmem:[#allocation2] sm:$0x1] %vm9_vm0, %v8_v2  }
  0x7c   :  { %v13_v3 = vpop.permute.xlu0 %12  }
  0x7d   :  { %16 = vst.msk [vmem:[#allocation2 + $0x1] sm:$0x1] %vm9_vm0, %v13_v3  }
  0x84   :  { %v21_v4 = vld [vmem:[#allocation2] sm:$0x3] }
  0x85   :  { %24 = vst [vmem:[#allocation0] sm:$0x3] %v21_v4 }
  0x86   :  { %48 = shalt.err (!%p45_p4)
}
  0x87   :  { %32 = dma.vmem_to_hbm [thread:$0]  %s30_s9, 32, %s78_s1, [#allocation1]  }
  0x88   :  { %57 = dma.done.wait [#allocation1], 32  }
  0x89   :  { %58 = vsyncadd [#allocation1], 4294967264 }
  0x8a   :  { %34 = vsyncpa [#allocation1], 1 }

// kernel: transformer_forward.4
= control target key start
LH: loop header
LB: loop body
LE: loop exit
PB: predicated region body
PF: predicated region fallthrough
CT: control target
= control target key end

     0   :  { %s505_s0 = inlined_call_operand.vmem [shape: s32[16], index: 0, kind: input, shape index: {}]   ;;  %s506_s1 = inlined_call_operand.vmem [shape: f32[128,1,128], index: 1, kind: input, shape index: {}]   ;;  %s507_s2 = inlined_call_operand.hbm [shape: f32[16,1,128], index: 2, kind: input, shape index: {}]   ;;  %s508_s3 = inlined_call_operand.vmem [shape: f32[16,1,128], index: 3, kind: output, shape index: {}]  }
   0x1   :  { %s8_s14 = sshll.u32 %s505_s0, 4  ;;  %s9_s14 = int_to_ptr.vmem [resolvable:$true] %s8_s14 }
   0x2   :  { %s298_s15 = scalar_lea.vmem %s9_s14, 16  ;;  %p303_p1 = scmp.lt.s32.totalorder %s9_s14, %s9_s14 }
   0x3   :  { %p299_p0 = scmp.ne.s32.totalorder %s9_s14, %s298_s15  ;;  %p304_p2 = scmp.lt.s32.totalorder %s298_s15, %s298_s15 }
   0x5   :  { %p305_p3 = por %p304_p2, %p303_p1 }
   0x7   :  { %p306_p4 = pnand %p305_p3, %p299_p0 }
   0x9   :  { %309 = shalt.err (!%p306_p4)  }
   0xa   :  { %s376_s16 = smov [#allocation3]  }
   0xb   :  { %11 = dma.vmem_to_smem %s9_s14, 16, %s376_s16, [#allocation2] }
   0xc   :  { %354 = dma.done.wait [#allocation2], 16 }
   0xd   :  { %355 = vsyncadd [#allocation2], 4294967280 }
   0xe   :  { %13 = sfence }
   0xf   :  { %14 = vsyncpa [#allocation5], 0 }
  0x10   :  { %16 = vsyncpa [#allocation5 + $0x1], 0  ;;  %s401_s17 = smov 0   ;;  %s403_s18 = smov 0  }
  0x11   :  { %s405_s0 = smov 0   ;;  %s407_s19 = smov 0  }
  0x12 LB: > { %s420_s20 = sadd.s32 4294967295, %s374_s19   ;;  %s423_s21 = sadd.s32 1, %s374_s19   ;;  %s374_s19 = sphi %s407_s19, %s518_s19   ;;  %s370_s0 = sphi %s405_s0, %s517_s0   ;;  %s366_s18 = sphi %s403_s18, %s516_s18   ;;  %s362_s17 = sphi %s401_s17, %s515_s17  }
  0x13   : > { %s54_s22 = ssub.s32 %s374_s19, %s423_s21  ;;  %s57_s23 = sadd.s32 1, %s370_s0 }
  0x14   : > { %p55_p5 = scmp.eq.s32.totalorder %s54_s22, 0  ;;  %p64_p6 = scmp.ne.s32.totalorder %s370_s0, %s366_s18 }
  0x15   : > { %p65_p7 = scmp.eq.s32.totalorder %s374_s19, 0  ;;  %p70_p8 = scmp.ne.s32.totalorder %s366_s18, %s362_s17 }
  0x16   : > { %s433_s24 = scalar_select %p55_p5, %s370_s0, %s57_s23  }
  0x17   : > { %p66_p9 = por %p65_p7, %p64_p6  ;;  %p71_p10 = scmp.eq.s32.totalorder %s420_s20, 0 }
  0x18   : > { %p264_p11 = scmp.lt.s32.totalorder %s374_s19, 16  ;;  %s128_s26 = sand.u32 1, %s370_s0  }
  0x19   : > { %p437_p12 = por %p71_p10, %p70_p8  ;;  %s254_s27 = sshll.u32 %s374_s19, 4 }
  0x1a   : > { %s131_s28 = scalar_lea.vmem [#allocation4], %s128_s26  ;;  %s446_s5 = scalar_lea.hbm %s507_s2, %s254_s27 }
  0x1b   : > { %s510_s25 = scalar_select %p437_p12, 1, 0 }
  0x1c   : > { %s138_s29 = sshll.u32 %s131_s28, 4  ;;  %p450_p13 = pnand %p264_p11, %p66_p9  ;;  %s448_s29 = int_to_ptr.vmem [resolvable:$true] %s138_s29 }
  0x1d   : > { %s129_s7 = scalar_lea.sflag [#allocation5], %s128_s26  ;;  %s310_s8 = scalar_lea.hbm %s446_s5, 16 }
  0x1e   : > { %p311_p2 = scmp.ne.s32.totalorder %s446_s5, %s310_s8  ;;  %p312_p3 = pneg %p450_p13 }
  0x1f   : > { %s315_s11 = scalar_lea.hbm %s507_s2, 256  ;;  %p316_p6 = scmp.lt.s32.totalorder %s446_s5, %s507_s2 }
  0x20   : > { %p313_p4 = pnand %p312_p3, %p311_p2  ;;  %p317_p7 = scmp.lt.s32.totalorder %s315_s11, %s310_s8 }
  0x22   : > { %p314_p5 = pneg %p313_p4  ;;  %p318_p8 = por %p317_p7, %p316_p6 }
  0x24   : > { %p319_p9 = pnand %p318_p8, %p314_p5 }
  0x26   : > { %322 = shalt.err (!%p319_p9)
}
  0x27   : > { %s323_s14 = scalar_lea.vmem %s448_s29, 16  ;;  %s377_s15 = smov [#allocation4]  }
  0x28   : > { %p324_p10 = scmp.ne.s32.totalorder %s448_s29, %s323_s14  ;;  %s328_s16 = sshll.u32 %s377_s15, 4  ;;  %s329_s16 = int_to_ptr.vmem [resolvable:$false] %s328_s16 }
  0x29   : > { %s330_s17 = scalar_lea.vmem %s329_s16, 32  ;;  %p331_p4 = scmp.lt.s32.totalorder %s448_s29, %s329_s16 }
  0x2a   : > { %p326_p11 = pnand %p324_p10, %p312_p3  ;;  %p332_p0 = scmp.lt.s32.totalorder %s330_s17, %s323_s14 }
  0x2c   : > { %p327_p2 = pneg %p326_p11  ;;  %p333_p1 = por %p332_p0, %p331_p4 }
  0x2e   : > { %p334_p12 = pnand %p333_p1, %p327_p2 }
  0x30   : > { %337 = shalt.err (!%p334_p12)
}
  0x31   : > { %263 = dma.hbm_to_vmem [thread:$0]  (!%p450_p13), %s446_s5, 16, %s448_s29, %s129_s7  }
  0x32   : > { %p512_p5 = scmp.lt.s32.totalorder %s374_s19, 17  ;;  %p513_p6 = scmp.ge.s32.totalorder %s374_s19, 1 }
  0x34   : > { %p144_p3 = pnand %p513_p6, %p512_p5 }
  0x35   : > { %s149_s22 = sand.u32 (!%p144_p3), 1, %s366_s18   ;;  %p514_p7 = scmp.ne.s32.totalorder (!%p144_p3), %s510_s25, 0 }
  0x36   : > { %147 = sbr.rel (%p144_p3) target bundleno = 74 (0x4a), region = 28  ;;  %s150_s23 = scalar_lea.sflag (!%p144_p3), [#allocation5], %s149_s22 }
  0x37   : > { %s152_s26 = scalar_lea.vmem (!%p144_p3), [#allocation4], %s149_s22 }
  0x3b   : > { %357 = dma.done.wait (%p514_p7), %s150_s23, 16  }
  0x3c   : > { %359 = vsyncadd (%p514_p7), %s150_s23, 4294967280  ;;  %s174_s27 = sld [smem:[#allocation3 + %s420_s20]]  ;;  %p179_p12 = scmp.lt.s32.totalorder %s420_s20, 15  ;;  %v183_v0 = vld [vmem:[%s152_s26] sm:$0x1] }
  0x3e   : > { %s520_s20 = smov (!%p179_p12, %s420_s20), 15 }
  0x3f   : > { %s181_s5 = scalar_lea.vmem %s508_s3, %s520_s20 }
  0x42   : > { %p175_p13 = scmp.lt.s32.totalorder %s174_s27, 127 }
  0x44   : > { %s522_s27 = smov (!%p175_p13, %s174_s27), 127 }
  0x45   : > { %s177_s29 = scalar_lea.vmem %s506_s1, %s522_s27 }
  0x46   : > { %v182_v1 = vld [vmem:[%s177_s29] sm:$0x1] }
  0x47   : > { %v184_v2 = vadd.f32 %v183_v0, %v182_v1 }
  0x49   : > { %185 = vst [vmem:[%s181_s5] sm:$0x1] %v184_v2 }
  0x4a PF: > { %p19_p0 = scmp.ge.s32.totalorder %s423_s21, 18   ;;  %s515_s17 = smov %s366_s18 }
  0x4b   : > { %s516_s18 = smov %s370_s0  ;;  %s517_s0 = smov %s433_s24 }
  0x4c   : > { %s518_s19 = smov %s423_s21  ;;  %21 = sbr.rel (!%p19_p0) target bundleno = 18 (0x12), region = 71 }
  0x51   :  { %203 = vsyncpa [#allocation5], 1 }
  0x52   :  { %205 = vsyncpa [#allocation5 + $0x1], 1 }

// kernel: transformer_forward.3
= control target key start
LH: loop header
LB: loop body
LE: loop exit
PB: predicated region body
PF: predicated region fallthrough
CT: control target
= control target key end

     0   :  { %11 = vsyncpa [#allocation3], 0  ;;  %s582_s0 = inlined_call_operand.vmem [shape: f32[16,32], index: 0, kind: input, shape index: {}]   ;;  %s583_s1 = inlined_call_operand.hbm [shape: f32[32,32], index: 1, kind: input, shape index: {}]   ;;  %s584_s2 = inlined_call_operand.vmem [shape: f32[64,32], index: 2, kind: input, shape index: {}]   ;;  %s585_s3 = inlined_call_operand.hbm [shape: f32[1,64], index: 3, kind: input, shape index: {}]   ;;  %s586_s4 = inlined_call_operand.vmem [shape: s32[16,1], index: 4, kind: input, shape index: {}]   ;;  %s587_s5 = inlined_call_operand.vmem [shape: s32[16,1], index: 5, kind: input, shape index: {}]   ;;  %s588_s6 = inlined_call_operand.vmem [shape: s32[16,128], index: 6, kind: output, shape index: {}]  }
   0x1   :  { %12 = vsyncpa [#allocation5], 0  ;;  %s458_s21 = smov [#allocation2]  }
   0x2   :  { %s20_s22 = sshll.u32 %s458_s21, 4  ;;  %s21_s22 = int_to_ptr.vmem [resolvable:$true] %s20_s22 }
   0x3   :  { %s422_s23 = scalar_lea.vmem %s21_s22, 512  ;;  %p427_p1 = scmp.lt.s32.totalorder %s21_s22, %s21_s22 }
   0x4   :  { %p423_p0 = scmp.ne.s32.totalorder %s21_s22, %s422_s23  ;;  %p428_p2 = scmp.lt.s32.totalorder %s422_s23, %s422_s23 }
   0x6   :  { %p429_p3 = por %p428_p2, %p427_p1 }
   0x8   :  { %p430_p4 = pnand %p429_p3, %p423_p0 }
   0xa   :  { %433 = shalt.err (!%p430_p4)
}
   0xb   :  { %s459_s24 = smov 128   ;;  %s460_s25 = smov 8  }
   0xc   :  { %26 = dma.hbm_to_vmem [thread:$0]  %s583_s1, 512, %s21_s22, [#allocation3], %s459_s24, %s459_s24, %s460_s25  }
   0xd   :  { %s461_s28 = smov [#allocation4]  }
   0xe   :  { %s35_s29 = sshll.u32 %s461_s28, 4  ;;  %s36_s29 = int_to_ptr.vmem [resolvable:$true] %s35_s29 }
   0xf   :  { %s442_s30 = scalar_lea.vmem %s36_s29, 16  ;;  %s446_s7 = scalar_lea.vmem %s36_s29, 32 }
  0x10   :  { %p443_p5 = scmp.ne.s32.totalorder %s36_s29, %s442_s30  ;;  %p447_p6 = scmp.lt.s32.totalorder %s36_s29, %s36_s29 }
  0x11   :  { %p448_p7 = scmp.lt.s32.totalorder %s446_s7, %s442_s30 }
  0x13   :  { %p449_p8 = por %p448_p7, %p447_p6 }
  0x15   :  { %p450_p9 = pnand %p449_p8, %p443_p5 }
  0x17   :  { %453 = shalt.err (!%p450_p9)
}
  0x18   :  { %38 = dma.hbm_to_vmem [thread:$0]  %s585_s3, 16, %s36_s29, [#allocation5]  }
  0x19   :  { %454 = dma.done.wait [#allocation3], 512  }
  0x1a   :  { %455 = vsyncadd [#allocation3], 4294966784 }
  0x1b   :  { %456 = dma.done.wait [#allocation5], 16  }
  0x1c   :  { %457 = vsyncadd [#allocation5], 4294967280  ;;  %vm55_vm0 = vcmask 261120   ;;  %v54_v0 = vld [vmem:[#allocation2 + $0x18] sm:$0xff]  ;;  %v53_v1 = vld [vmem:[#allocation2 + $0x10] sm:$0xff]  ;;  %vm263_vm1 = vcmask 523264   ;;  %v261_v25 = vlaneseq }
  0x1d   :  { %377 = vmatprep.subr.mxu0 %v54_v0  ;;  %v49_v2 = vld [vmem:[%s582_s0] sm:$0xff]  ;;  %v52_v3 = vld [vmem:[#allocation2 + $0x8] sm:$0xff]  ;;  %v144_v4 = vld [vmem:[%s584_s2 + $0x38] sm:$0xff]  ;;  %v462_v45 = vmov 0   ;;  %vm312_vm7 = vcmask 1040384  }
  0x1e   :  { %378 = vmatpush3.msra.mxu0 %v54_v0  ;;  %385 = vmatprep.mubr.msk.f32.mxu0 %vm55_vm0, %v49_v2  ;;  %v143_v5 = vld [vmem:[%s584_s2 + $0x30] sm:$0xff]  ;;  %v51_v6 = vld [vmem:[#allocation2] sm:$0xff]  ;;  %v50_v7 = vld [vmem:[%s582_s0 + $0x8] sm:$0xff]  ;;  %v556_v26 = vand.u32 127, %v261_v25  ;;  %v318_v47 = vshrl.u32 %v261_v25, 7 }
  0x1f   :  { %379 = vmatprep.subr.mxu0 %v53_v1  ;;  %388 = vmatprep.subr.msk.mxu1 %vm55_vm0, %v144_v4  ;;  %v142_v8 = vld [vmem:[%s584_s2 + $0x28] sm:$0xff]  ;;  %v141_v9 = vld [vmem:[%s584_s2 + $0x20] sm:$0xff]  ;;  %v140_v10 = vld [vmem:[%s584_s2 + $0x18] sm:$0xff] }
  0x20   :  { %380 = vmatpush3.msra.mxu0 %v53_v1  ;;  %389 = vmatpush3.xpose.msk.msra.mxu1 %vm55_vm0, %v144_v4  ;;  %v139_v11 = vld [vmem:[%s584_s2 + $0x10] sm:$0xff]  ;;  %v138_v12 = vld [vmem:[%s584_s2 + $0x8] sm:$0xff]  ;;  %v137_v13 = vld [vmem:[%s584_s2] sm:$0xff]  ;;  %v320_v54 = vand.u32 7, %v318_v47  ;;  %v319_v55 = vadd.s32 8, %v318_v47  ;;  %vm326_vm11 = vcmp.eq.s32.totalorder %v556_v26, 0 }
  0x21   :  { %381 = vmatprep.subr.mxu0 %v52_v3  ;;  %390 = vmatprep.subr.msk.mxu1 %vm55_vm0, %v143_v5  ;;  %v360_v20 = vld [vmem:[#allocation4] ss:$0 sm:$0xff]  ;;  %v305_v57 = vld [vmem:[%s586_s4 + $0x8] sm:$0xff]  ;;  %vm329_vm12 = vcmp.eq.s32.totalorder %v556_v26, 1 }
  0x22   :  { %382 = vmatpush3.msra.mxu0 %v52_v3  ;;  %412 = vset.pattern.permute.xlu0 %v462_v45  ;;  %v304_v48 = vld [vmem:[%s586_s4] sm:$0xff]  ;;  %vm307_vm8 = vcmp.ne.s32.totalorder %v305_v57, 0  ;;  %v309_v62 = vld [vmem:[%s587_s5 + $0x8] sm:$0xff]  ;;  %vm322_vm9 = vcmp.eq.s32.totalorder %v320_v54, 0  ;;  %v321_v0 = vand.u32 7, %v319_v55 }
  0x23   :  { %383 = vmatprep.subr.mxu0 %v51_v6  ;;  %413 = vset.pattern.permute.xlu1 %v462_v45  ;;  %vm306_vm6 = vcmp.ne.s32.totalorder %v304_v48, 0  ;;  %v308_v53 = vld [vmem:[%s587_s5] sm:$0xff] }
  0x24   :  { %384 = vmatpush3.msra.mxu0 %v51_v6  ;;  %391 = vmatpush3.xpose.msk.msra.mxu1 %vm55_vm0, %v143_v5  ;;  %vm323_vm10 = vcmp.eq.s32.totalorder %v321_v0, 0 }
  0x25   :  { %386 = vmatmul.mubr.msk.f32.vlgmr.msra.gmra.mxu0 %vm55_vm0, %v50_v7  ;;  %392 = vmatprep.subr.msk.mxu1 %vm55_vm0, %v142_v8 }
  0x28   :  { %393 = vmatpush3.xpose.msk.msra.mxu1 %vm55_vm0, %v142_v8 }
  0x29   :  { %394 = vmatprep.subr.msk.mxu1 %vm55_vm0, %v141_v9 }
  0x2c   :  { %395 = vmatpush3.xpose.msk.msra.mxu1 %vm55_vm0, %v141_v9 }
  0x2d   :  { %396 = vmatprep.subr.msk.mxu1 %vm55_vm0, %v140_v10 }
  0x30   :  { %397 = vmatpush3.xpose.msk.msra.mxu1 %vm55_vm0, %v140_v10 }
  0x31   :  { %398 = vmatprep.subr.msk.mxu1 %vm55_vm0, %v139_v11 }
  0x34   :  { %399 = vmatpush3.xpose.msk.msra.mxu1 %vm55_vm0, %v139_v11 }
  0x35   :  { %400 = vmatprep.subr.msk.mxu1 %vm55_vm0, %v138_v12 }
  0x38   :  { %401 = vmatpush3.xpose.msk.msra.mxu1 %vm55_vm0, %v138_v12 }
  0x39   :  { %402 = vmatprep.subr.msk.mxu1 %vm55_vm0, %v137_v13 }
  0x3c   :  { %403 = vmatpush3.xpose.msk.msra.mxu1 %vm55_vm0, %v137_v13 }
  0xe5   :  { %v387_v14 = vpop.f32.mrf.mxu0 }
  0xe7   :  { %v128_v15 = vpop.f32.mrf.mxu0 }
  0xe8   :  { %404 = vmatprep.mubr.msk.f32.mxu1 %vm55_vm0, %v128_v15 }
  0xe9   :  { %405 = vmatmul.mubr.msk.f32.vlgmr.msra.gmra.mxu1 %vm55_vm0, %v387_v14 }
 0x1a9   :  { %v406_v16 = vpop.f32.mrf.mxu1 }
 0x1aa   :  { %v252_v18 = vmul.f32 2.0, %v406_v16 }
 0x1ab   :  { %v241_v17 = vpop.f32.mrf.mxu1 }
 0x1ac   :  { %v251_v19 = vmul.f32 2.0, %v241_v17  ;;  %v260_v23 = vsub.f32 %v360_v20, %v252_v18 }
 0x1ae   :  { %v259_v21 = vsub.f32 %v360_v20, %v251_v19  ;;  %v267_v24 = vsel %vm263_vm1, %v260_v23, inf }
 0x1b0   :  { %v264_v22 = vsel %vm263_vm1, %v259_v21, inf }
 0x1b1   :  { %265 = vmin.xlane.f32.xlu0 %v264_v22 }
 0x1b5   :  { %268 = vmin.xlane.f32.xlu0 %v267_v24 }
 0x23a   :  { %v266_v27 = vpop.xlane.xlu0 %265 }
 0x23b   :  { %vm270_vm2 = vcmp.le.f32.partialorder %v259_v21, %v266_v27 }
 0x23c   :  { %v272_v28 = vsel %vm270_vm2, %v556_v26, 64 }
 0x23d   :  { %v274_v29 = vsel %vm263_vm1, %v272_v28, 2147483647 }
 0x23e   :  { %v269_v30 = vpop.xlane.xlu0 %268  ;;  %v276_v31 = vshra.s32 %v274_v29, 16  ;;  %v275_v37 = vand.u32 65535, %v274_v29 }
 0x23f   :  { %vm271_vm3 = vcmp.le.f32.partialorder %v260_v23, %v269_v30 }
 0x240   :  { %v273_v32 = vsel %vm271_vm3, %v556_v26, 64  ;;  %v278_v33 = vcvt.s32.f32 %v276_v31  ;;  %v277_v39 = vcvt.s32.f32 %v275_v37 }
 0x241   :  { %v289_v34 = vsel %vm263_vm1, %v273_v32, 2147483647 }
 0x242   :  { %279 = vmin.xlane.f32.xlu1 %v278_v33  ;;  %v291_v35 = vshra.s32 %v289_v34, 16  ;;  %v290_v40 = vand.u32 65535, %v289_v34 }
 0x244   :  { %v293_v36 = vcvt.s32.f32 %v291_v35  ;;  %v292_v43 = vcvt.s32.f32 %v290_v40 }
 0x246   :  { %294 = vmin.xlane.f32.xlu1 %v293_v36 }
 0x2cb   :  { %v280_v38 = vpop.xlane.xlu1 %279 }
 0x2cc   :  { %vm281_vm4 = vcmp.eq.f32.partialorder %v278_v33, %v280_v38  ;;  %v286_v46 = vcvt.f32.s32 %v280_v38 }
 0x2cd   :  { %v282_v41 = vsel %vm281_vm4, %v277_v39, inf }
 0x2ce   :  { %283 = vmin.xlane.f32.xlu0 %v282_v41  ;;  %v287_v50 = vshll.u32 %v286_v46, 16 }
 0x2cf   :  { %v295_v42 = vpop.xlane.xlu1 %294 }
 0x2d0   :  { %vm296_vm5 = vcmp.eq.f32.partialorder %v293_v36, %v295_v42  ;;  %v301_v51 = vcvt.f32.s32 %v295_v42 }
 0x2d1   :  { %v297_v44 = vsel %vm296_vm5, %v292_v43, inf }
 0x2d2   :  { %298 = vmin.xlane.f32.xlu1 %v297_v44  ;;  %v302_v59 = vshll.u32 %v301_v51, 16 }
 0x357   :  { %v284_v49 = vpop.xlane.xlu0 %283 }
 0x358   :  { %v285_v52 = vcvt.f32.s32 %v284_v49 }
 0x35a   :  { %v288_v56 = vadd.s32 %v287_v50, %v285_v52 }
 0x35b   :  { %v299_v58 = vpop.xlane.xlu1 %298 }
 0x35c   :  { %v300_v60 = vcvt.f32.s32 %v299_v58  ;;  %v310_v61 = vsel %vm306_vm6, %v288_v56, %v308_v53  ;;  %v327_v9 = vsel %vm326_vm11, %v288_v56, 0 }
 0x35d   :  { %v313_v63 = vrot.slane %v310_v61, 7 }
 0x35e   :  { %v303_v1 = vadd.s32 %v302_v59, %v300_v60 }
 0x35f   :  { %v316_v2 = vsel %vm312_vm7, 0, %v313_v63 }
 0x360   :  { %v311_v3 = vsel %vm307_vm8, %v303_v1, %v309_v62  ;;  %v324_v4 = vsel %vm322_vm9, 0, %v316_v2  ;;  %v328_v13 = vsel %vm326_vm11, %v303_v1, 0 }
 0x361   :  { %331 = vperm.xlu0 %412, %v324_v4   ;;  %v314_v5 = vrot.slane %v311_v3, 7 }
 0x363   :  { %v315_v6 = vsel %vm312_vm7, %v313_v63, %v314_v5 }
 0x364   :  { %v325_v7 = vsel %vm323_vm10, 0, %v315_v6 }
 0x365   :  { %334 = vperm.xlu1 %413, %v325_v7  }
 0x3dc   :  { %v332_v8 = vpop.permute.xlu0 %331 }
 0x3dd   :  { %v336_v10 = vsel %vm329_vm12, %v332_v8, 0 }
 0x3de   :  { %v338_v11 = vadd.s32 %v336_v10, %v327_v9 }
 0x3e0   :  { %340 = vst [vmem:[%s588_s6] sm:$0xff] %v338_v11  ;;  %v335_v12 = vpop.permute.xlu1 %334 }
 0x3e1   :  { %v337_v14 = vsel %vm329_vm12, %v335_v12, 0 }
 0x3e2   :  { %v339_v15 = vadd.s32 %v337_v14, %v328_v13 }
 0x3e4   :  { %341 = vst [vmem:[%s588_s6 + $0x8] sm:$0xff] %v339_v15 }
 0x3e5   :  { %346 = vsyncpa [#allocation3], 1 }
 0x3e6   :  { %347 = vsyncpa [#allocation5], 1 }

// kernel: transformer_forward.5
= control target key start
LH: loop header
LB: loop body
LE: loop exit
PB: predicated region body
PF: predicated region fallthrough
CT: control target
= control target key end

     0   :  { %s4730_s0 = inlined_call_operand.vmem [shape: f32[16,128], index: 0, kind: input, shape index: {}]   ;;  %s4731_s1 = inlined_call_operand.hbm [shape: f32[2,1,128], index: 1, kind: input, shape index: {}]   ;;  %s4732_s2 = inlined_call_operand.hbm [shape: f32[2,1,128], index: 2, kind: input, shape index: {}]   ;;  %s4733_s3 = inlined_call_operand.hbm [shape: bf16[2,128,384], index: 3, kind: input, shape index: {}]   ;;  %s4734_s4 = inlined_call_operand.vmem [shape: f32[2,1,384], index: 4, kind: input, shape index: {}]   ;;  %s4735_s5 = inlined_call_operand.vmem [shape: bf16[2,128,128], index: 5, kind: input, shape index: {}]   ;;  %s4736_s6 = inlined_call_operand.hbm [shape: f32[2,1,128], index: 6, kind: input, shape index: {}]   ;;  %s4737_s7 = inlined_call_operand.hbm [shape: f32[2,1,128], index: 7, kind: input, shape index: {}]   ;;  %s4738_s8 = inlined_call_operand.hbm [shape: f32[2,1,128], index: 8, kind: input, shape index: {}]   ;;  %s4739_s9 = inlined_call_operand.vmem [shape: bf16[2,128,512], index: 9, kind: input, shape index: {}]   ;;  %s4740_s10 = inlined_call_operand.hbm [shape: f32[2,1,512], index: 10, kind: input, shape index: {}]   ;;  %s4741_s11 = inlined_call_operand.hbm [shape: bf16[2,512,128], index: 11, kind: input, shape index: {}]   ;;  %s4742_s12 = inlined_call_operand.hbm [shape: f32[2,1,128], index: 12, kind: input, shape index: {}]   ;;  %s4743_s13 = inlined_call_operand.vmem [shape: f32[1,128], index: 13, kind: input, shape index: {}]   ;;  %s4744_s14 = inlined_call_operand.vmem [shape: f32[1,128], index: 14, kind: input, shape index: {}]   ;;  %s4745_s15 = inlined_call_operand.vmem [shape: bf16[128,128], index: 15, kind: input, shape index: {}]   ;;  %s4746_s16 = inlined_call_operand.hbm [shape: f32[16,128], index: 16, kind: output, shape index: {}]  }
   0x1   :  { %4768 = sst [smem:[#allocation39_spill]] %s4730_s0 }
   0x2   :  { %4769 = sst [smem:[#allocation40_spill]] %s4731_s1 }
   0x3   :  { %4770 = sst [smem:[#allocation41_spill]] %s4732_s2 }
   0x4   :  { %4771 = sst [smem:[#allocation42_spill]] %s4733_s3 }
   0x5   :  { %4772 = sst [smem:[#allocation43_spill]] %s4734_s4 }
   0x6   :  { %4773 = sst [smem:[#allocation44_spill]] %s4735_s5 }
   0x7   :  { %4774 = sst [smem:[#allocation45_spill]] %s4736_s6 }
   0x8   :  { %4775 = sst [smem:[#allocation46_spill]] %s4737_s7 }
   0x9   :  { %4776 = sst [smem:[#allocation47_spill]] %s4738_s8 }
   0xa   :  { %4777 = sst [smem:[#allocation48_spill]] %s4739_s9 }
   0xb   :  { %4778 = sst [smem:[#allocation49_spill]] %s4741_s11 }
   0xc   :  { %4779 = sst [smem:[#allocation50_spill]] %s4743_s13 }
   0xd   :  { %4780 = sst [smem:[#allocation51_spill]] %s4744_s14 }
   0xe   :  { %4781 = sst [smem:[#allocation52_spill]] %s4745_s15 }
   0xf   :  { %4782 = sst [smem:[#allocation53_spill]] %s4746_s16 }
  0x10   :  { %21 = vsyncpa [#allocation4], 0 }
  0x11   :  { %23 = vsyncpa [#allocation4 + $0x1], 0 }
  0x12   :  { %24 = vsyncpa [#allocation7], 0 }
  0x13   :  { %26 = vsyncpa [#allocation7 + $0x1], 0 }
  0x14   :  { %27 = vsyncpa [#allocation10], 0 }
  0x15   :  { %29 = vsyncpa [#allocation10 + $0x1], 0 }
  0x16   :  { %30 = vsyncpa [#allocation13], 0 }
  0x17   :  { %32 = vsyncpa [#allocation13 + $0x1], 0 }
  0x18   :  { %33 = vsyncpa [#allocation16], 0 }
  0x19   :  { %35 = vsyncpa [#allocation16 + $0x1], 0 }
  0x1a   :  { %36 = vsyncpa [#allocation5], 0 }
  0x1b   :  { %38 = vsyncpa [#allocation5 + $0x1], 0  ;;  %s4086_s21 = smov 0   ;;  %s4088_s22 = smov 0  }
  0x1c   :  { %s4090_s23 = smov 0   ;;  %s4092_s24 = smov 0  }
  0x1d   :  { %s4094_s25 = smov 0   ;;  %s4096_s26 = smov 0  }
  0x1e   :  { %s4098_s27 = smov 0   ;;  %s4100_s28 = smov 0  }
  0x1f   :  { %s4102_s29 = smov 0   ;;  %s4104_s30 = smov 0  }
  0x20   :  { %s4106_s0 = smov 0  }
  0x21 LB: > { %4783 = sst [smem:[#allocation25_spill]] %s3937_s21  ;;  %s4140_s17 = sadd.s32 4294967295, %s3977_s0   ;;  %s3977_s0 = sphi %s4106_s0, %s44_s0   ;;  %s3973_s30 = sphi %s4104_s30, %s4845_s30   ;;  %s3969_s29 = sphi %s4102_s29, %s4849_s29   ;;  %s3965_s28 = sphi %s4100_s28, %s4843_s28   ;;  %s3961_s27 = sphi %s4098_s27, %s4848_s27   ;;  %s3957_s26 = sphi %s4096_s26, %s4842_s26   ;;  %s3953_s25 = sphi %s4094_s25, %s4847_s25   ;;  %s3949_s24 = sphi %s4092_s24, %s4846_s24   ;;  %s3945_s23 = sphi %s4090_s23, %s4840_s23   ;;  %s3941_s22 = sphi %s4088_s22, %s4839_s22   ;;  %s3937_s21 = sphi %s4086_s21, %s4838_s21  }
  0x22   : > { %4784 = sst [smem:[#allocation26_spill]] %s3941_s22  ;;  %s2923_s18 = sadd.s32 4294967294, %s3977_s0  }
  0x23   : > { %4785 = sst [smem:[#allocation27_spill]] %s3945_s23  ;;  %s53_s19 = sadd.s32 1, %s3969_s29 }
  0x24   : > { %4786 = sst [smem:[#allocation28_spill]] %s3957_s26  ;;  %s56_s20 = sadd.s32 1, %s3973_s30 }
  0x25   : > { %4787 = sst [smem:[#allocation29_spill]] %s3961_s27  ;;  %p54_p0 = scmp.ge.s32.totalorder %s53_s19, 2 }
  0x26   : > { %4788 = sst [smem:[#allocation30_spill]] %s3965_s28  ;;  %s89_s16 = sadd.s32 1, %s3957_s26 }
  0x27   : > { %4789 = sst [smem:[#allocation31_spill]] %s3973_s30  ;;  %p96_p1 = scmp.ne.s32.totalorder %s3957_s26, %s3953_s25 }
  0x28   : > { %4790 = sst [smem:[#allocation32_spill]] %s3977_s0  ;;  %p97_p2 = scmp.eq.s32.totalorder %s3977_s0, 0 }
  0x29   : > { %s4851_s19 = smov (%p54_p0, %s53_s19), 0  ;;  %s4853_s20 = smov (!%p54_p0, %s56_s20), %s3973_s30 }
  0x2a   : > { %4791 = sst [smem:[#allocation33_spill]] %s4851_s19  ;;  %s86_s14 = ssub.s32 %s3969_s29, %s4851_s19 }
  0x2b   : > { %p4154_p3 = por %p97_p2, %p96_p1  ;;  %p58_p4 = scmp.ge.s32.totalorder %s4853_s20, 2 }
  0x2c   : > { %p87_p5 = scmp.eq.s32.totalorder %s86_s14, 0  ;;  %p102_p6 = scmp.ne.s32.totalorder %s3953_s25, %s3949_s24 }
  0x2d   : > { %p103_p7 = scmp.eq.s32.totalorder %s4140_s17, 0  ;;  %s4855_s20 = smov (%p58_p4, %s4853_s20), 0 }
  0x2e   : > { %4793 = sst [smem:[#allocation34_spill]] %s4855_s20  ;;  %s461_s9 = ssub.s32 %s3973_s30, %s4855_s20 }
  0x2f   : > { %s4163_s15 = scalar_select %p87_p5, %s3957_s26, %s89_s16  }
  0x30   : > { %p4165_p8 = por %p103_p7, %p102_p6  ;;  %p462_p9 = scmp.eq.s32.totalorder %s461_s9, 0 }
  0x31   : > { %4794 = sst [smem:[#allocation35_spill]] %s4163_s15  ;;  %s464_s5 = sadd.s32 1, %s3945_s23 }
  0x32   : > { %p474_p10 = scmp.ne.s32.totalorder %s3945_s23, %s3941_s22  ;;  %p475_p11 = scmp.eq.s32.totalorder %s4140_s17, 3 }
  0x33   : > { %s4176_s14 = scalar_select %p462_p9, %s3945_s23, %s464_s5  }
  0x34   : > { %p4178_p12 = por %p475_p11, %p474_p10  ;;  %p480_p13 = scmp.ne.s32.totalorder %s3941_s22, %s3937_s21 }
  0x35   : > { %4796 = sst [smem:[#allocation36_spill]] %s4176_s14  ;;  %p481_p0 = scmp.eq.s32.totalorder %s2923_s18, 3 }
  0x36   : > { %s4797_s24 = scalar_select %p4178_p12, 1, 0 }
  0x37   : > { %p3329_p1 = scmp.lt.s32.totalorder %s3977_s0, 4  ;;  %s4186_s16 = sand.u32 1, %s3957_s26  }
  0x38   : > { %4798 = sst [smem:[#allocation37_spill]] %s4797_s24  ;;  %p4188_p2 = por %p481_p0, %p480_p13 }
  0x39   : > { %s4193_s9 = sshll.u32 %s3969_s29, 4  ;;  %p4197_p4 = pnand %p3329_p1, %p4154_p3 }
  0x3a   : > { %s4799_s20 = scalar_select %p4188_p2, 1, 0 }
  0x3b   : > { %s4202_s30 = sand.u32 1, %s3977_s0   ;;  %s4802_s2 = sld [smem:[#allocation41_spill]] }
  0x3c   : > { %4800 = sst [smem:[#allocation38_spill]] %s4799_s20  ;;  %s537_s14 = scalar_lea.vmem [#allocation6], %s4186_s16 }
  0x3d   : > { %s544_s23 = sshll.u32 %s537_s14, 4  ;;  %p2939_p5 = scmp.ge.s32.totalorder %s3977_s0, 1  ;;  %s545_s23 = int_to_ptr.vmem [resolvable:$true] %s544_s23 }
  0x3e   : > { %p701_p6 = scmp.lt.s32.totalorder %s3977_s0, 5  ;;  %s4759_s20 = scalar_lea.sflag [#allocation7], %s4202_s30 }
  0x3f   : > { %p4214_p7 = pneg %p4197_p4  ;;  %s3602_s21 = scalar_lea.vmem %s545_s23, 16 }
  0x40   : > { %p3603_p3 = scmp.ne.s32.totalorder %s545_s23, %s3602_s21  ;;  %s3979_s15 = smov [#allocation6]  }
  0x41   : > { %s542_s26 = scalar_lea.hbm %s4802_s2, %s4193_s9  ;;  %s3607_s18 = sshll.u32 %s3979_s15, 4  ;;  %s3608_s18 = int_to_ptr.vmem [resolvable:$false] %s3607_s18 }
  0x42   : > { %p3605_p9 = pnand %p3603_p3, %p4214_p7  ;;  %s3609_s2 = scalar_lea.vmem %s3608_s18, 32 }
  0x43   : > { %p3610_p11 = scmp.lt.s32.totalorder %s545_s23, %s3608_s18  ;;  %p3611_p13 = scmp.lt.s32.totalorder %s3609_s2, %s3602_s21 }
  0x44   : > { %p3606_p10 = pneg %p3605_p9 }
  0x45   : > { %p3612_p0 = por %p3611_p13, %p3610_p11 }
  0x47   : > { %p3613_p1 = pnand %p3612_p0, %p3606_p10 }
  0x49   : > { %3616 = shalt.err (!%p3613_p1)
}
  0x4a   : > { %3303 = dma.hbm_to_vmem [thread:$0]  (!%p4197_p4), %s542_s26, 16, %s545_s23, %s4759_s20  }
  0x4b   : > { %p4228_p3 = pnand %p2939_p5, %p701_p6  ;;  %s4805_s6 = sld [smem:[#allocation45_spill]] }
  0x4c   : > { %s590_s18 = scalar_lea.vmem [#allocation9], %s4186_s16  ;;  %s4763_s4 = scalar_lea.sflag [#allocation10], %s4202_s30 }
  0x4d   : > { %s597_s24 = sshll.u32 %s590_s18, 4  ;;  %s3980_s23 = smov [#allocation9]   ;;  %s598_s24 = int_to_ptr.vmem [resolvable:$true] %s597_s24 }
  0x4e   : > { %s3630_s27 = scalar_lea.vmem %s598_s24, 16  ;;  %s3635_s26 = sshll.u32 %s3980_s23, 4  ;;  %s3636_s26 = int_to_ptr.vmem [resolvable:$false] %s3635_s26 }
  0x4f   : > { %p3631_p9 = scmp.ne.s32.totalorder %s598_s24, %s3630_s27  ;;  %s3637_s20 = scalar_lea.vmem %s3636_s26, 32 }
  0x50   : > { %p3638_p5 = scmp.lt.s32.totalorder %s598_s24, %s3636_s26  ;;  %p3639_p6 = scmp.lt.s32.totalorder %s3637_s20, %s3630_s27 }
  0x51   : > { %s595_s15 = scalar_lea.hbm %s4805_s6, %s4193_s9  ;;  %p3633_p10 = pnand %p3631_p9, %p4214_p7 }
  0x52   : > { %p3640_p13 = por %p3639_p6, %p3638_p5 }
  0x53   : > { %p3634_p11 = pneg %p3633_p10 }
  0x55   : > { %p3641_p0 = pnand %p3640_p13, %p3634_p11 }
  0x57   : > { %3644 = shalt.err (!%p3641_p0)
}
  0x58   : > { %3309 = dma.hbm_to_vmem [thread:$0]  (!%p4197_p4), %s595_s15, 16, %s598_s24, %s4763_s4  }
  0x59   : > { %s4806_s8 = sld [smem:[#allocation47_spill]]  ;;  %s624_s23 = scalar_lea.vmem [#allocation12], %s4186_s16 }
  0x5a   : > { %s631_s6 = sshll.u32 %s624_s23, 4  ;;  %s4766_s27 = scalar_lea.sflag [#allocation13], %s4202_s30  ;;  %s632_s6 = int_to_ptr.vmem [resolvable:$true] %s631_s6 }
  0x5b   : > { %s3658_s20 = scalar_lea.vmem %s632_s6, 16  ;;  %s3981_s26 = smov [#allocation12]  }
  0x5c   : > { %p3659_p1 = scmp.ne.s32.totalorder %s632_s6, %s3658_s20  ;;  %s3663_s0 = sshll.u32 %s3981_s26, 4  ;;  %s3664_s0 = int_to_ptr.vmem [resolvable:$false] %s3663_s0 }
  0x5d   : > { %s3665_s28 = scalar_lea.vmem %s3664_s0, 32  ;;  %p3666_p11 = scmp.lt.s32.totalorder %s632_s6, %s3664_s0 }
  0x5e   : > { %p3661_p9 = pnand %p3659_p1, %p4214_p7  ;;  %p3667_p5 = scmp.lt.s32.totalorder %s3665_s28, %s3658_s20 }
  0x5f   : > { %s629_s18 = scalar_lea.hbm %s4806_s8, %s4193_s9 }
  0x60   : > { %p3662_p10 = pneg %p3661_p9  ;;  %p3668_p6 = por %p3667_p5, %p3666_p11 }
  0x62   : > { %p3669_p13 = pnand %p3668_p6, %p3662_p10 }
  0x64   : > { %3672 = shalt.err (!%p3669_p13)
}
  0x65   : > { %3315 = dma.hbm_to_vmem [thread:$0]  (!%p4197_p4), %s629_s18, 16, %s632_s6, %s4766_s27  }
  0x66   : > { %s2935_s24 = sshll.u32 %s4186_s16, 8  ;;  %s3075_s15 = sshll.u32 %s3969_s29, 12 }
  0x67   : > { %s4807_s11 = sld [smem:[#allocation49_spill]]  ;;  %s669_s0 = scalar_lea.vmem [#allocation15], %s2935_s24 }
  0x68   : > { %s676_s28 = sshll.u32 %s669_s0, 4  ;;  %s666_s20 = scalar_lea.sflag [#allocation16], %s4202_s30  ;;  %s677_s28 = int_to_ptr.vmem [resolvable:$true] %s676_s28 }
  0x69   : > { %s3686_s26 = scalar_lea.vmem %s677_s28, 4096  ;;  %s3982_s4 = smov [#allocation15]  }
  0x6a   : > { %p3687_p0 = scmp.ne.s32.totalorder %s677_s28, %s3686_s26  ;;  %s3691_s8 = sshll.u32 %s3982_s4, 4  ;;  %s3692_s8 = int_to_ptr.vmem [resolvable:$false] %s3691_s8 }
  0x6b   : > { %s3693_s22 = scalar_lea.vmem %s3692_s8, 8192  ;;  %p3694_p10 = scmp.lt.s32.totalorder %s677_s28, %s3692_s8 }
  0x6c   : > { %p3689_p1 = pnand %p3687_p0, %p4214_p7  ;;  %p3695_p11 = scmp.lt.s32.totalorder %s3693_s22, %s3686_s26 }
  0x6d   : > { %s675_s23 = scalar_lea.hbm %s4807_s11, %s3075_s15 }
  0x6e   : > { %p3690_p9 = pneg %p3689_p1  ;;  %p3696_p5 = por %p3695_p11, %p3694_p10 }
  0x70   : > { %p3697_p6 = pnand %p3696_p5, %p3690_p9 }
  0x72   : > { %3700 = shalt.err (!%p3697_p6)
}
  0x73   : > { %s3983_s6 = smov 64   ;;  %s3984_s18 = smov 4  }
  0x74   : > { %3321 = dma.hbm_to_vmem [thread:$0]  (!%p4197_p4), %s675_s23, 4096, %s677_s28, %s666_s20, %s3983_s6, %s3983_s6, %s3984_s18  }
  0x75   : > { %s4808_s1 = sld [smem:[#allocation40_spill]]  ;;  %s520_s22 = scalar_lea.vmem [#allocation3], %s4186_s16 }
  0x76   : > { %s527_s15 = sshll.u32 %s520_s22, 4  ;;  %s3273_s2 = smul.u32 192, %s4186_s16  ;;  %s528_s15 = int_to_ptr.vmem [resolvable:$true] %s527_s15 }
  0x77   : > { %s518_s21 = scalar_lea.sflag [#allocation4], %s4186_s16  ;;  %s3714_s0 = scalar_lea.vmem %s528_s15, 16 }
  0x78   : > { %p3715_p13 = scmp.ne.s32.totalorder %s528_s15, %s3714_s0  ;;  %s3985_s26 = smov [#allocation3]  }
  0x79   : > { %s3719_s27 = sshll.u32 %s3985_s26, 4  ;;  %s3720_s27 = int_to_ptr.vmem [resolvable:$false] %s3719_s27 }
  0x7a   : > { %p3717_p0 = pnand %p3715_p13, %p4214_p7  ;;  %s3721_s11 = scalar_lea.vmem %s3720_s27, 32 }
  0x7b   : > { %s525_s8 = scalar_lea.hbm %s4808_s1, %s4193_s9  ;;  %p3722_p9 = scmp.lt.s32.totalorder %s528_s15, %s3720_s27 }
  0x7c   : > { %p3718_p1 = pneg %p3717_p0  ;;  %p3723_p10 = scmp.lt.s32.totalorder %s3721_s11, %s3714_s0 }
  0x7e   : > { %p3724_p11 = por %p3723_p10, %p3722_p9 }
  0x80   : > { %p3725_p5 = pnand %p3724_p11, %p3718_p1 }
  0x82   : > { %3728 = shalt.err (!%p3725_p5)
}
  0x83   : > { %3300 = dma.hbm_to_vmem [thread:$0]  (!%p4197_p4), %s525_s8, 16, %s528_s15, %s518_s21  }
  0x84   : > { %s3274_s23 = smul.u32 3072, %s3969_s29  ;;  %s555_s28 = scalar_lea.vmem [#allocation8], %s3273_s2 }
  0x85   : > { %s562_s6 = sshll.u32 %s555_s28, 4  ;;  %s4809_s3 = sld [smem:[#allocation42_spill]]  ;;  %s563_s6 = int_to_ptr.vmem [resolvable:$true] %s562_s6 }
  0x86   : > { %s3742_s22 = scalar_lea.vmem %s563_s6, 3072  ;;  %s3986_s11 = smov [#allocation8]  }
  0x87   : > { %p3743_p6 = scmp.ne.s32.totalorder %s563_s6, %s3742_s22  ;;  %s3747_s27 = sshll.u32 %s3986_s11, 4  ;;  %s3748_s27 = int_to_ptr.vmem [resolvable:$false] %s3747_s27 }
  0x88   : > { %s3749_s0 = scalar_lea.vmem %s3748_s27, 6144  ;;  %p3750_p1 = scmp.lt.s32.totalorder %s563_s6, %s3748_s27 }
  0x89   : > { %p3745_p13 = pnand %p3743_p6, %p4214_p7  ;;  %p3751_p9 = scmp.lt.s32.totalorder %s3749_s0, %s3742_s22 }
  0x8b   : > { %s561_s24 = scalar_lea.hbm %s4809_s3, %s3274_s23  ;;  %p3746_p0 = pneg %p3745_p13 }
  0x8c   : > { %p3752_p10 = por %p3751_p9, %p3750_p1 }
  0x8e   : > { %p3753_p11 = pnand %p3752_p10, %p3746_p0 }
  0x90   : > { %3756 = shalt.err (!%p3753_p11)
}
  0x91   : > { %s3987_s8 = smov 192   ;;  %s3988_s15 = smov 12  }
  0x92   : > { %s4810_s2 = scalar_lea.sflag [#allocation7], %s4202_s30  ;;  %s4811_s7 = sld [smem:[#allocation46_spill]] }
  0x93   : > { %3306 = dma.hbm_to_vmem [thread:$0]  (!%p4197_p4), %s561_s24, 3072, %s563_s6, %s4810_s2, %s3987_s8, %s3987_s8, %s3988_s15  }
  0x94   : > { %s607_s28 = scalar_lea.vmem [#allocation11], %s4186_s16  ;;  %s2932_s4 = sshll.u32 %s4186_s16, 2 }
  0x95   : > { %s614_s18 = sshll.u32 %s607_s28, 4  ;;  %s3989_s11 = smov [#allocation11]   ;;  %s615_s18 = int_to_ptr.vmem [resolvable:$true] %s614_s18 }
  0x96   : > { %s3770_s22 = scalar_lea.vmem %s615_s18, 16  ;;  %s3775_s27 = sshll.u32 %s3989_s11, 4  ;;  %s3776_s27 = int_to_ptr.vmem [resolvable:$false] %s3775_s27 }
  0x97   : > { %p3771_p5 = scmp.ne.s32.totalorder %s615_s18, %s3770_s22  ;;  %s3777_s0 = scalar_lea.vmem %s3776_s27, 32 }
  0x98   : > { %s612_s23 = scalar_lea.hbm %s4811_s7, %s4193_s9  ;;  %p3778_p0 = scmp.lt.s32.totalorder %s615_s18, %s3776_s27 }
  0x99   : > { %p3773_p6 = pnand %p3771_p5, %p4214_p7  ;;  %p3779_p1 = scmp.lt.s32.totalorder %s3777_s0, %s3770_s22 }
  0x9b   : > { %p3774_p13 = pneg %p3773_p6  ;;  %p3780_p9 = por %p3779_p1, %p3778_p0 }
  0x9d   : > { %p3781_p10 = pnand %p3780_p9, %p3774_p13 }
  0x9f   : > { %3784 = shalt.err (!%p3781_p10)
}
  0xa0   : > { %s4812_s6 = scalar_lea.sflag [#allocation10], %s4202_s30  ;;  %s3074_s24 = sshll.u32 %s3969_s29, 6 }
  0xa1   : > { %3312 = dma.hbm_to_vmem [thread:$0]  (!%p4197_p4), %s612_s23, 16, %s615_s18, %s4812_s6  }
  0xa2   : > { %s656_s2 = scalar_lea.hbm %s4740_s10, %s3074_s24  ;;  %s650_s21 = scalar_lea.vmem [#allocation14], %s2932_s4 }
  0xa3   : > { %s658_s26 = sshll.u32 %s650_s21, 4  ;;  %s3990_s22 = smov [#allocation14]   ;;  %s659_s26 = int_to_ptr.vmem [resolvable:$true] %s658_s26 }
  0xa4   : > { %s3798_s28 = scalar_lea.vmem %s659_s26, 64  ;;  %s3803_s11 = sshll.u32 %s3990_s22, 4  ;;  %s3804_s11 = int_to_ptr.vmem [resolvable:$false] %s3803_s11 }
  0xa5   : > { %p3799_p11 = scmp.ne.s32.totalorder %s659_s26, %s3798_s28  ;;  %s3805_s27 = scalar_lea.vmem %s3804_s11, 128 }
  0xa6   : > { %p3806_p13 = scmp.lt.s32.totalorder %s659_s26, %s3804_s11  ;;  %p3807_p0 = scmp.lt.s32.totalorder %s3805_s27, %s3798_s28 }
  0xa7   : > { %p3801_p5 = pnand %p3799_p11, %p4214_p7 }
  0xa8   : > { %p3808_p1 = por %p3807_p0, %p3806_p13 }
  0xa9   : > { %p3802_p6 = pneg %p3801_p5 }
  0xab   : > { %p3809_p9 = pnand %p3808_p1, %p3802_p6 }
  0xad   : > { %3812 = shalt.err (!%p3809_p9)
}
  0xae   : > { %s4813_s23 = scalar_lea.sflag [#allocation13], %s4202_s30  ;;  %s694_s0 = scalar_lea.hbm %s4742_s12, %s4193_s9 }
  0xaf   : > { %3318 = dma.hbm_to_vmem [thread:$0]  (!%p4197_p4), %s656_s2, 64, %s659_s26, %s4813_s23  }
  0xb0   : > { %s689_s6 = scalar_lea.vmem [#allocation17], %s4186_s16  ;;  %s3991_s15 = smov [#allocation17]  }
  0xb1   : > { %s696_s24 = sshll.u32 %s689_s6, 4  ;;  %s3831_s21 = sshll.u32 %s3991_s15, 4  ;;  %s697_s24 = int_to_ptr.vmem [resolvable:$true] %s696_s24  ;;  %s3832_s21 = int_to_ptr.vmem [resolvable:$false] %s3831_s21 }
  0xb2   : > { %s3826_s8 = scalar_lea.vmem %s697_s24, 16  ;;  %s3833_s28 = scalar_lea.vmem %s3832_s21, 32 }
  0xb3   : > { %p3827_p10 = scmp.ne.s32.totalorder %s697_s24, %s3826_s8  ;;  %p3834_p6 = scmp.lt.s32.totalorder %s697_s24, %s3832_s21 }
  0xb4   : > { %p3835_p13 = scmp.lt.s32.totalorder %s3833_s28, %s3826_s8 }
  0xb5   : > { %p3829_p11 = pnand %p3827_p10, %p4214_p7 }
  0xb6   : > { %p3836_p0 = por %p3835_p13, %p3834_p6 }
  0xb7   : > { %p3830_p5 = pneg %p3829_p11 }
  0xb9   : > { %p3837_p1 = pnand %p3836_p0, %p3830_p5 }
  0xbb   : > { %3840 = shalt.err (!%p3837_p1)
}
  0xbc   : > { %3324 = dma.hbm_to_vmem [thread:$0]  (!%p4197_p4), %s694_s0, 16, %s697_s24, %s666_s20  }
  0xbd   : > { %705 = sbr.rel (%p4228_p3) target bundleno = 3579 (0xdfb), region = 84  ;;  %s4325_s16 = sand.u32 (!%p4228_p3), 1, %s3953_s25  }
  0xbe   : > { %s708_s9 = scalar_lea.sflag (!%p4228_p3), [#allocation4], %s4325_s16 }
  0xc2   : > { %3912 = dma.done.wait (%p4165_p8), %s708_s9, 16  }
  0xc3   : > { %3914 = vsyncadd (%p4165_p8), %s708_s9, 4294967280  ;;  %s715_s30 = sand.u32 1, %s4140_s17  }
  0xc4   : > { %s716_s5 = scalar_lea.sflag [#allocation7], %s715_s30 }
  0xc5   : > { %3916 = dma.done.wait (%p4165_p8), %s716_s5, 3088  }
  0xc6   : > { %3918 = vsyncadd (%p4165_p8), %s716_s5, 4294964208  ;;  %s3275_s20 = smul.u32 192, %s4325_s16  ;;  %s733_s26 = scalar_lea.sflag [#allocation10], %s715_s30 }
  0xc8   : > { %s4340_s2 = scalar_lea.vmem [#allocation8], %s3275_s20 }
  0xc9   : > { %3920 = dma.done.wait (%p4165_p8), %s733_s26, 32  }
  0xca   : > { %3922 = vsyncadd (%p4165_p8), %s733_s26, 4294967264  ;;  %s749_s11 = scalar_lea.sflag [#allocation13], %s715_s30 }
  0xcb   : > { %3924 = dma.done.wait (%p4165_p8), %s749_s11, 80  }
  0xcc   : > { %3926 = vsyncadd (%p4165_p8), %s749_s11, 4294967216  ;;  %s2940_s23 = sshll.u32 %s4325_s16, 2  ;;  %s2941_s18 = sshll.u32 %s4325_s16, 8 }
  0xcd   : > { %s4355_s4 = scalar_lea.vmem [#allocation14], %s2940_s23  ;;  %s766_s0 = scalar_lea.sflag [#allocation16], %s715_s30 }
  0xce   : > { %s4357_s6 = scalar_lea.vmem [#allocation15], %s2941_s18 }
  0xcf   : > { %3928 = dma.done.wait (%p4165_p8), %s766_s0, 4112  }
  0xd0   : > { %3930 = vsyncadd (%p4165_p8), %s766_s0, 4294963184  ;;  %s4814_s24 = sld [smem:[#allocation26_spill]]  ;;  %s777_s5 = scalar_lea.vmem [#allocation17], %s4325_s16 }
  0xd1   : > { %s4815_s8 = sld [smem:[#allocation30_spill]] }
  0xd2   : > { %s4816_s15 = sld [smem:[#allocation29_spill]] }
  0xd3   : > { %s4817_s20 = sld [smem:[#allocation39_spill]] }
  0xd4   : > { %s4818_s17 = sld [smem:[#allocation43_spill]] }
  0xd5   : > { %s4819_s14 = sld [smem:[#allocation44_spill]] }
  0xd6   : > { %s4767_s21 = sand.u32 1, %s4814_s24  }
  0xd7   : > { %s4366_s28 = sshll.u32 %s4767_s21, 3  ;;  %p878_p4 = scmp.lt.s32.totalorder %s4815_s8, 1 }
  0xd8   : > { %p882_p7 = scmp.lt.s32.totalorder %s4816_s15, 1  ;;  %p2948_p8 = scmp.ne.s32.totalorder %s4816_s15, 0 }
  0xd9   : > { %s4857_s8 = smov (!%p878_p4, %s4815_s8), 1 }
  0xda   : > { %s883_s9 = scalar_select %p882_p7, %s4816_s15, 1 }
  0xdb   : > { %s2943_s30 = sshll.u32 %s4857_s8, 3  ;;  %s4820_s8 = sld [smem:[#allocation48_spill]] }
  0xdc   : > { %s881_s26 = scalar_lea.vmem %s4817_s20, %s2943_s30  ;;  %s3276_s11 = smul.u32 3, %s883_s9 }
  0xdd   : > { %s3076_s23 = sshll.u32 %s883_s9, 6  ;;  %s3077_s18 = sshll.u32 %s883_s9, 8 }
  0xde   : > { %s4378_s22 = scalar_lea.vmem %s4818_s17, %s3276_s11  ;;  %s4383_s13 = scalar_lea.vmem %s4819_s14, %s3076_s23 }
  0xdf   : > { %s877_s30 = scalar_lea.vmem [#allocation18], %s4366_s28  ;;  %900 = sbr.rel (%p2948_p8) target bundleno = 230 (0xe6), region = 124 }
  0xe1   : > { %s4388_s7 = scalar_lea.vmem %s4820_s8, %s3077_s18 }
  0xe4   : > { %v901_v0 = vld [vmem:[%s881_s26] sm:$0xff] }
  0xe5   : > { %902 = vst [vmem:[#allocation2] sm:$0xff] %v901_v0 }
  0xe6 PF: > { %v3431_v2 = vld [vmem:[%s4340_s2 + $0xac] ss:$12 sps:$4 sm:$0xff]   ;;  %v3433_v3 = vld [vmem:[%s4340_s2 + $0xa8] ss:$12 sps:$4 sm:$0xff]   ;;  %v3992_v4 = vmov 0.0   ;;  %v3993_v23 = vmov 0   ;;  %v967_v42 = vlaneseq }
  0xe7   : > { %3165 = vmatprep.subr.bf16.mxu1 %v3992_v4  ;;  %v3434_v5 = vld [vmem:[%s4340_s2 + $0xb0] ss:$12 sps:$4 sm:$0xff]   ;;  %v3435_v6 = vld [vmem:[%s4340_s2 + $0x94] ss:$12 sps:$4 sm:$0xff]   ;;  %1110 = vmatprep.subr.bf16.mxu0 %v3431_v2  ;;  %v3438_v8 = vld [vmem:[%s4340_s2 + $0x98] ss:$12 sps:$4 sm:$0xff]  }
  0xe8   : > { %v3437_v7 = vld [vmem:[%s4340_s2 + $0x90] ss:$12 sps:$4 sm:$0xff]   ;;  %1111 = vmatpush1.bf16.msra.mxu0 %v3433_v3  ;;  %3166 = vmatpush3.bf16.msra.mxu1 %v3434_v5  ;;  %v3441_v14 = vld [vmem:[%s4340_s2 + $0x78] ss:$12 sps:$4 sm:$0xff]   ;;  %v3442_v15 = vld [vmem:[%s4340_s2 + $0x80] ss:$12 sps:$4 sm:$0xff]  }
  0xe9   : > { %1112 = vmatprep.subr.bf16.mxu0 %v3435_v6  ;;  %3167 = vmatprep.subr.bf16.mxu1 %v3992_v4  ;;  %v3439_v13 = vld [vmem:[%s4340_s2 + $0x7c] ss:$12 sps:$4 sm:$0xff]   ;;  %v3443_v16 = vld [vmem:[%s4340_s2 + $0x64] ss:$12 sps:$4 sm:$0xff]   ;;  %v3445_v17 = vld [vmem:[%s4340_s2 + $0x60] ss:$12 sps:$4 sm:$0xff]  }
  0xea   : > { %v3446_v18 = vld [vmem:[%s4340_s2 + $0x68] ss:$12 sps:$4 sm:$0xff]   ;;  %v3447_v19 = vld [vmem:[%s4340_s2 + $0x4c] ss:$12 sps:$4 sm:$0xff]   ;;  %v3450_v21 = vld [vmem:[%s4340_s2 + $0x50] ss:$12 sps:$4 sm:$0xff]   ;;  %1142 = vmatprep.mubr.bf16.mxu0 %v3993_v23 }
  0xeb   : > { %v3449_v20 = vld [vmem:[%s4340_s2 + $0x48] ss:$12 sps:$4 sm:$0xff]   ;;  %vm3994_vm0 = vmmov 0   ;;  %v3453_v24 = vld [vmem:[%s4340_s2 + $0x30] ss:$12 sps:$4 sm:$0xff]   ;;  %s4821_s1 = scalar_lea.vmem [#allocation3], %s4325_s16 }
  0xec   : > { %v4393_v1 = vld [vmem:[#allocation2] sm:$0xff]  ;;  %1113 = vmatpush1.bf16.msra.mxu0 %v3437_v7  ;;  %3168 = vmatpush3.bf16.msra.mxu1 %v3438_v8  ;;  %v3455_v26 = vld [vmem:[%s4340_s2 + $0x1c] ss:$12 sps:$4 sm:$0xff]   ;;  %v3458_v28 = vld [vmem:[%s4340_s2 + $0x20] ss:$12 sps:$4 sm:$0xff]   ;;  %s4822_s3 = scalar_lea.vmem [#allocation6], %s4325_s16 }
  0xed   : > { %906 = vadd.xlane.f32.xlu0 %v4393_v1  ;;  %3169 = vmatprep.subr.bf16.mxu1 %v3992_v4  ;;  %v3451_v22 = vld [vmem:[%s4340_s2 + $0x34] ss:$12 sps:$4 sm:$0xff]   ;;  %v3454_v25 = vld [vmem:[%s4340_s2 + $0x38] ss:$12 sps:$4 sm:$0xff]   ;;  %v4442_v43 = vshrl.u32 %v967_v42, 7  ;;  %vm1198_vm1 = vcmask 261120  }
  0xee   : > { %1114 = vmatprep.subr.bf16.mxu0 %v3439_v13  ;;  %3181 = vmatprep.mubr.msk.bf16.mxu1 %vm3994_vm0, %v3992_v4  ;;  %v3457_v27 = vld [vmem:[%s4340_s2 + $0x18] ss:$12 sps:$4 sm:$0xff]   ;;  %v3461_v30 = vld [vmem:[%s4340_s2] ss:$12 sps:$4 sm:$0xff]   ;;  %v3462_v31 = vld [vmem:[%s4340_s2 + $0x8] ss:$12 sps:$4 sm:$0xff]  }
  0xef   : > { %v3459_v29 = vld [vmem:[%s4340_s2 + $0x4] ss:$12 sps:$4 sm:$0xff]   ;;  %v2949_v36 = vld [vmem:[%s4821_s1] ss:$0 sm:$0xff]  ;;  %v973_v44 = vsub.s32 1, %v4442_v43  ;;  %v977_v46 = vsub.s32 2, %v4442_v43 }
  0xf0   : > { %1115 = vmatpush1.bf16.msra.mxu0 %v3441_v14  ;;  %3170 = vmatpush3.bf16.msra.mxu1 %v3442_v15  ;;  %v2950_v38 = vld [vmem:[%s4822_s3] ss:$0 sm:$0xff]  ;;  %v969_v50 = vsub.s32 0, %v4442_v43  ;;  %s3995_s14 = smov 96   ;;  %s3996_s2 = smov 32   ;;  %vm1264_vm2 = vcmask 1043456  }
  0xf1   : > { %3171 = vmatprep.subr.bf16.mxu1 %v3992_v4  ;;  %1116 = vmatprep.subr.bf16.mxu0 %v3443_v16  ;;  %v965_v45 = vld [vmem:[%s4378_s22] sm:$0x7]  ;;  %v4466_v5 = vand.u32 127, %v967_v42  ;;  %vm1247_vm4 = vcmask 64512   ;;  %s3997_s22 = smov 64   ;;  %vm1660_vm5 = vcmask 523264  }
  0xf2   : > { %v974_v47 = vrot.slane %v965_v45, %v973_v44  ;;  %v978_v53 = vrot.slane %v965_v45, %v977_v46  ;;  %v970_v57 = vrot.slane %v965_v45, %v969_v50  ;;  %vm1662_vm6 = vcmask 785408   ;;  %s4824_s17 = scalar_lea.vmem [#allocation11], %s4325_s16  ;;  %s4825_s27 = scalar_lea.vmem [#allocation12], %s4325_s16 }
  0xf3   : > { %vm1195_vm3 = vcmp.ge.s32.totalorder %v4442_v43, %v4466_v5 }
  0xf4   : > { %1117 = vmatpush1.bf16.msra.mxu0 %v3445_v17  ;;  %3172 = vmatpush3.bf16.msra.mxu1 %v3446_v18 }
  0xf5   : > { %1118 = vmatprep.subr.bf16.mxu0 %v3447_v19  ;;  %3173 = vmatprep.subr.bf16.mxu1 %v3992_v4 }
  0xf8   : > { %1119 = vmatpush1.bf16.msra.mxu0 %v3449_v20  ;;  %3174 = vmatpush3.bf16.msra.mxu1 %v3450_v21 }
  0xf9   : > { %1120 = vmatprep.subr.bf16.mxu0 %v3451_v22  ;;  %3175 = vmatprep.subr.bf16.mxu1 %v3992_v4 }
  0xfc   : > { %1121 = vmatpush1.bf16.msra.mxu0 %v3453_v24  ;;  %3176 = vmatpush3.bf16.msra.mxu1 %v3454_v25 }
  0xfd   : > { %1122 = vmatprep.subr.bf16.mxu0 %v3455_v26  ;;  %3177 = vmatprep.subr.bf16.mxu1 %v3992_v4 }
 0x100   : > { %1123 = vmatpush1.bf16.msra.mxu0 %v3457_v27  ;;  %3178 = vmatpush3.bf16.msra.mxu1 %v3458_v28 }
 0x101   : > { %1124 = vmatprep.subr.bf16.mxu0 %v3459_v29  ;;  %3179 = vmatprep.subr.bf16.mxu1 %v3992_v4 }
 0x104   : > { %1125 = vmatpush1.bf16.msra.mxu0 %v3461_v30  ;;  %3180 = vmatpush3.bf16.msra.mxu1 %v3462_v31 }
 0x105   : > { %3185 = vmatprep.subr.bf16.mxu1 %v3992_v4  ;;  %3209 = vmatprep.subr.bf16.mxu0 %v3992_v4 }
 0x176   : > { %v907_v9 = vpop.xlane.xlu0 %906 }
 0x177   : > { %v909_v10 = vmul.f32 0.0078125, %v907_v9 }
 0x179   : > { %v910_v11 = vsub.f32 %v4393_v1, %v909_v10 }
 0x17b   : > { %v911_v12 = vmul.f32 %v910_v11, %v910_v11 }
 0x17d   : > { %912 = vadd.xlane.f32.xlu0 %v911_v12 }
 0x206   : > { %v913_v32 = vpop.xlane.xlu0 %912 }
 0x207   : > { %v914_v33 = vmul.f32 0.0078125, %v913_v32 }
 0x209   : > { %v915_v34 = vadd.f32 1e-05, %v914_v33 }
 0x20b   : > { %3551 = vrsqrt.f32 %v915_v34 }
 0x218   : > { %v3552_v35 = vpop.eup %3551 }
 0x219   : > { %v917_v37 = vmul.f32 %v3552_v35, %v910_v11 }
 0x21b   : > { %v924_v39 = vmul.f32 %v2949_v36, %v917_v37 }
 0x21d   : > { %v931_v40 = vadd.f32 %v2950_v38, %v924_v39 }
 0x21f   : > { %v932_v41 = vpack.c.bf16 %v931_v40, %v931_v40 }
 0x221   : > { %1143 = vmatmul.mubr.bf16.vlgmr.msra.gmra.mxu0 %v932_v41  ;;  %3182 = vmatmul.mubr.bf16.vlgmr.msra.gmra.mxu1 %v932_v41 }
 0x222   : > { %3187 = vmatprep.mubr.msk.bf16.mxu1 %vm3994_vm0, %v3992_v4  ;;  %3211 = vmatprep.mubr.msk.bf16.mxu0 %vm3994_vm0, %v3992_v4 }
 0x2e1   : > { %v1144_v48 = vpop.f32.mrf.mxu0  ;;  %v1185_v49 = vpop.f32.mrf.mxu1 }
 0x2e2   : > { %v1186_v61 = vadd.f32 %v1185_v49, %v978_v53  ;;  %v1145_v63 = vadd.f32 %v1144_v48, %v970_v57 }
 0x2e3   : > { %v1146_v51 = vpop.f32.mrf.mxu0  ;;  %v3183_v52 = vpop.f32.mrf.mxu1 }
 0x2e4   : > { %v1147_v54 = vadd.f32 %v1146_v51, %v974_v47  ;;  %v4457_v0 = vpack.c.bf16 %v1186_v61, %v1186_v61  ;;  %v1196_v2 = vpack.c.bf16 %v1145_v63, %v1145_v63 }
 0x2e5   : > { %v1148_v55 = vpop.f32.mrf.mxu0  ;;  %v1188_v56 = vpop.f32.mrf.mxu1 }
 0x2e6   : > { %v1197_v58 = vpack.c.bf16 %v1147_v54, %v1147_v54  ;;  %v1266_v3 = vsel %vm1264_vm2, %v4457_v0, 0 }
 0x2e7   : > { %v1149_v59 = vpop.f32.mrf.mxu0  ;;  %v3184_v60 = vpop.f32.mrf.mxu1 }
 0x2e8   : > { %1312 = vrot.lane.b32.xlu0 %v1197_v58, %s3995_s14  ;;  %v1203_v62 = vsel %vm1198_vm1, %v1197_v58, 0 }
 0x2e9   : > { %3186 = vmatpush3.bf16.xpose.msra.mxu1 %v1203_v62 }
 0x2ea   : > { %3191 = vmatprep.subr.bf16.mxu1 %v3992_v4 }
 0x2ec   : > { %1537 = vrot.lane.b32.xlu0 %v1197_v58, %s3996_s2 }
 0x2f0   : > { %3188 = vmatmul.mubr.msk.bf16.vlgmr.msra.gmra.mxu1 %vm1198_vm1, %v1196_v2 }
 0x2f1   : > { %3192 = vmatpush3.bf16.msra.mxu1 %v1266_v3  ;;  %3193 = vmatprep.mubr.msk.bf16.mxu1 %vm3994_vm0, %v3992_v4 }
 0x2f2   : > { %3197 = vmatprep.subr.bf16.mxu1 %v3992_v4 }
 0x35a   : > { %v1313_v20 = vpop.permute.xlu0 %1312 }
 0x35b   : > { %v1318_v30 = vsel %vm1198_vm1, %v1313_v20, 0 }
 0x35e   : > { %v1538_v25 = vpop.permute.xlu0 %1537 }
 0x35f   : > { %v1543_v28 = vsel %vm1198_vm1, %v1538_v25, 0 }
 0x3b0   : > { %v1239_v6 = vpop.f32.mrf.mxu1 }
 0x3b1   : > { %v1245_v7 = vmul.f32 0.17677669, %v1239_v6 }
 0x3b2   : > { %v3189_v8 = vpop.f32.mrf.mxu1 }
 0x3b3   : > { %v1246_v9 = vsel %vm1195_vm3, %v1245_v7, -1e+30 }
 0x3b4   : > { %v1242_v10 = vpop.f32.mrf.mxu1  ;;  %v1248_v11 = vsel %vm1247_vm4, %v1246_v9, -inf }
 0x3b5   : > { %1249 = vmax.xlane.f32.xlu1 %v1248_v11 }
 0x3b6   : > { %v3190_v12 = vpop.f32.mrf.mxu1 }
 0x43e   : > { %v1250_v13 = vpop.xlane.xlu1 %1249 }
 0x43f   : > { %v1251_v14 = vsub.f32 %v1246_v9, %v1250_v13 }
 0x441   : > { %v1252_v15 = vmul.f32 1.442695, %v1251_v14 }
 0x443   : > { %3553 = vpow2.f32 %v1252_v15 }
 0x450   : > { %v3554_v16 = vpop.eup %3553 }
 0x451   : > { %v1254_v17 = vsel %vm1247_vm4, %v3554_v16, 0.0 }
 0x452   : > { %1255 = vadd.xlane.f32.xlu1 %v1254_v17 }
 0x463   : > { %1309 = vrot.lane.b32.xlu1 %v1196_v2, %s3995_s14 }
 0x467   : > { %1425 = vrot.lane.b32.xlu1 %v1197_v58, %s3997_s22 }
 0x46b   : > { %1423 = vrot.lane.b32.xlu1 %v1196_v2, %s3997_s22 }
 0x46f   : > { %1535 = vrot.lane.b32.xlu1 %v1196_v2, %s3996_s2 }
 0x4db   : > { %v1256_v18 = vpop.xlane.xlu1 %1255 }
 0x4dc   : > { %3555 = vrcp.f32 %v1256_v18 }
 0x4df   : > { %v1310_v19 = vpop.permute.xlu1 %1309 }
 0x4e3   : > { %v1426_v21 = vpop.permute.xlu1 %1425 }
 0x4e4   : > { %v1431_v22 = vsel %vm1198_vm1, %v1426_v21, 0 }
 0x4e5   : > { %3210 = vmatpush3.bf16.xpose.msra.mxu0 %v1431_v22 }
 0x4e6   : > { %3221 = vmatprep.subr.bf16.mxu0 %v3992_v4 }
 0x4e7   : > { %v1424_v27 = vpop.permute.xlu1 %1423 }
 0x4e9   : > { %v3556_v24 = vpop.eup %3555 }
 0x4ea   : > { %v1258_v26 = vmul.f32 %v3556_v24, %v3554_v16 }
 0x4eb   : > { %v1536_v31 = vpop.permute.xlu1 %1535 }
 0x4ec   : > { %3212 = vmatmul.mubr.msk.bf16.vlgmr.msra.gmra.mxu0 %vm1198_vm1, %v1424_v27  ;;  %v1259_v29 = vpack.c.bf16 %v1258_v26, %v1258_v26 }
 0x4ed   : > { %3222 = vmatpush3.bf16.xpose.msra.mxu0 %v1543_v28  ;;  %3223 = vmatprep.mubr.msk.bf16.mxu0 %vm3994_vm0, %v3992_v4 }
 0x4ee   : > { %3194 = vmatmul.mubr.msk.bf16.vlgmr.msra.gmra.mxu1 %vm1247_vm4, %v1259_v29  ;;  %3233 = vmatprep.subr.bf16.mxu0 %v3992_v4 }
 0x4ef   : > { %3198 = vmatpush3.bf16.xpose.msra.mxu1 %v1318_v30  ;;  %3199 = vmatprep.mubr.msk.bf16.mxu1 %vm3994_vm0, %v3992_v4 }
 0x4f0   : > { %3203 = vmatprep.subr.bf16.mxu1 %v3992_v4 }
 0x4f4   : > { %3224 = vmatmul.mubr.msk.bf16.vlgmr.msra.gmra.mxu0 %vm1198_vm1, %v1536_v31 }
 0x4f5   : > { %3249 = vmatprep.mubr.msk.bf16.mxu0 %vm3994_vm0, %v3992_v4 }
 0x4f6   : > { %3200 = vmatmul.mubr.msk.bf16.vlgmr.msra.gmra.mxu1 %vm1198_vm1, %v1310_v19 }
 0x4f7   : > { %3205 = vmatprep.mubr.msk.bf16.mxu1 %vm3994_vm0, %v3992_v4 }
 0x5ac   : > { %v1467_v32 = vpop.f32.mrf.mxu0 }
 0x5ad   : > { %v1473_v33 = vmul.f32 0.17677669, %v1467_v32 }
 0x5ae   : > { %v4497_v34 = vpop.f32.mrf.mxu1  ;;  %v3213_v35 = vpop.f32.mrf.mxu0 }
 0x5af   : > { %v1474_v36 = vsel %vm1195_vm3, %v1473_v33, -1e+30  ;;  %v3463_v33 = vld [vmem:[%s4383_s13 + $0x38] sm:$0xff]   ;;  %v3464_v35 = vld [vmem:[%s4383_s13 + $0x30] sm:$0xff]  }
 0x5b0   : > { %v3195_v37 = vpop.f32.mrf.mxu1  ;;  %v1470_v38 = vpop.f32.mrf.mxu0  ;;  %v1475_v39 = vsel %vm1247_vm4, %v1474_v36, -inf  ;;  %3234 = vmatpush3.bf16.msra.mxu0 %v3463_v33  ;;  %v3501_v33 = vld [vmem:[%s4388_s7 + $0x40] ss:$16 sps:$4 sm:$0xff]  }
 0x5b1   : > { %1476 = vmax.xlane.f32.xlu1 %v1475_v39  ;;  %3235 = vmatprep.subr.bf16.mxu0 %v3992_v4  ;;  %v3466_v37 = vld [vmem:[%s4383_s13 + $0x20] sm:$0xff]   ;;  %v3467_v38 = vld [vmem:[%s4383_s13 + $0x18] sm:$0xff]   ;;  %v3468_v39 = vld [vmem:[%s4383_s13 + $0x10] sm:$0xff]  }
 0x5b2   : > { %v1305_v40 = vpop.f32.mrf.mxu1  ;;  %v3214_v41 = vpop.f32.mrf.mxu0 }
 0x5b3   : > { %v3469_v40 = vld [vmem:[%s4383_s13 + $0x8] sm:$0xff]  }
 0x5b4   : > { %v3196_v42 = vpop.f32.mrf.mxu1  ;;  %v1579_v45 = vpop.f32.mrf.mxu0  ;;  %3236 = vmatpush3.bf16.msra.mxu0 %v3464_v35  ;;  %v3504_v35 = vld [vmem:[%s4388_s7 + $0x48] ss:$16 sps:$4 sm:$0xff]  }
 0x5b5   : > { %v1585_v49 = vmul.f32 0.17677669, %v1579_v45  ;;  %3237 = vmatprep.subr.bf16.mxu0 %v3992_v4  ;;  %v3470_v45 = vld [vmem:[%s4383_s13] sm:$0xff]  }
 0x5b6   : > { %v1354_v47 = vpop.f32.mrf.mxu1  ;;  %v3225_v48 = vpop.f32.mrf.mxu0 }
 0x5b7   : > { %v1360_v51 = vmul.f32 0.17677669, %v1354_v47  ;;  %v1586_v58 = vsel %vm1195_vm3, %v1585_v49, -1e+30 }
 0x5b8   : > { %v3201_v52 = vpop.f32.mrf.mxu1  ;;  %v1582_v53 = vpop.f32.mrf.mxu0  ;;  %v1587_v60 = vsel %vm1247_vm4, %v1586_v58, -inf }
 0x5b9   : > { %v1361_v54 = vsel %vm1195_vm3, %v1360_v51, -1e+30 }
 0x5ba   : > { %v1357_v55 = vpop.f32.mrf.mxu1  ;;  %v3226_v56 = vpop.f32.mrf.mxu0  ;;  %v1362_v57 = vsel %vm1247_vm4, %v1361_v54, -inf }
 0x5bb   : > { %1363 = vmax.xlane.f32.xlu0 %v1362_v57 }
 0x5bc   : > { %v3202_v59 = vpop.f32.mrf.mxu1 }
 0x5bf   : > { %1588 = vmax.xlane.f32.xlu0 %v1587_v60 }
 0x63a   : > { %v1477_v61 = vpop.xlane.xlu1 %1476 }
 0x63b   : > { %v1478_v62 = vsub.f32 %v1474_v36, %v1477_v61  ;;  %v3465_v36 = vld [vmem:[%s4383_s13 + $0x28] sm:$0xff]   ;;  %s4823_s13 = scalar_lea.vmem [#allocation9], %s4325_s16 }
 0x63c   : > { %3238 = vmatpush3.bf16.msra.mxu0 %v3465_v36  ;;  %v3509_v36 = vld [vmem:[%s4388_s7 + $0x24] ss:$16 sps:$4 sm:$0xff]  }
 0x63d   : > { %v1479_v63 = vmul.f32 1.442695, %v1478_v62  ;;  %3239 = vmatprep.subr.bf16.mxu0 %v3992_v4 }
 0x63f   : > { %3557 = vpow2.f32 %v1479_v63 }
 0x640   : > { %3240 = vmatpush3.bf16.msra.mxu0 %v3466_v37  ;;  %v3512_v37 = vld [vmem:[%s4388_s7 + $0x2c] ss:$16 sps:$4 sm:$0xff]  }
 0x641   : > { %3241 = vmatprep.subr.bf16.mxu0 %v3992_v4 }
 0x644   : > { %v1364_v2 = vpop.xlane.xlu0 %1363  ;;  %3242 = vmatpush3.bf16.msra.mxu0 %v3467_v38  ;;  %v3507_v38 = vld [vmem:[%s4388_s7 + $0x20] ss:$16 sps:$4 sm:$0xff]  }
 0x645   : > { %v1365_v3 = vsub.f32 %v1361_v54, %v1364_v2  ;;  %3243 = vmatprep.subr.bf16.mxu0 %v3992_v4 }
 0x647   : > { %v1366_v6 = vmul.f32 1.442695, %v1365_v3  ;;  %v2991_v3 = vld [vmem:[%s4823_s13] ss:$0 sm:$0xff] }
 0x648   : > { %v1589_v7 = vpop.xlane.xlu0 %1588  ;;  %3244 = vmatpush3.bf16.msra.mxu0 %v3468_v39  ;;  %v3510_v39 = vld [vmem:[%s4388_s7 + $0x28] ss:$16 sps:$4 sm:$0xff]  }
 0x649   : > { %3559 = vpow2.f32 %v1366_v6  ;;  %v1590_v8 = vsub.f32 %v1586_v58, %v1589_v7  ;;  %3245 = vmatprep.subr.bf16.mxu0 %v3992_v4 }
 0x64b   : > { %v1591_v9 = vmul.f32 1.442695, %v1590_v8 }
 0x64c   : > { %v3558_v10 = vpop.eup %3557  ;;  %3246 = vmatpush3.bf16.msra.mxu0 %v3469_v40  ;;  %v3515_v40 = vld [vmem:[%s4388_s7 + $0x4] ss:$16 sps:$4 sm:$0xff]  }
 0x64d   : > { %3561 = vpow2.f32 %v1591_v9  ;;  %v1481_v5 = vsel %vm1247_vm4, %v3558_v10, 0.0  ;;  %3247 = vmatprep.subr.bf16.mxu0 %v3992_v4 }
 0x64e   : > { %1482 = vadd.xlane.f32.xlu0 %v1481_v5  ;;  %v3473_v5 = vld [vmem:[%s4388_s7 + $0xe4] ss:$16 sps:$4 sm:$0xff]  }
 0x650   : > { %3248 = vmatpush3.bf16.msra.mxu0 %v3470_v45  ;;  %v3516_v45 = vld [vmem:[%s4388_s7 + $0x8] ss:$16 sps:$4 sm:$0xff]  }
 0x656   : > { %v3560_v11 = vpop.eup %3559 }
 0x657   : > { %v1368_v12 = vsel %vm1247_vm4, %v3560_v11, 0.0 }
 0x658   : > { %1369 = vadd.xlane.f32.xlu0 %v1368_v12  ;;  %v3476_v12 = vld [vmem:[%s4388_s7 + $0xec] ss:$16 sps:$4 sm:$0xff]  }
 0x659   : > { %2061 = vmatprep.subr.bf16.mxu0 %v3476_v12  ;;  %v3535_v12 = vld [vmem:[%s4357_s6 + $0x58] sm:$0xff]  }
 0x65a   : > { %v3562_v13 = vpop.eup %3561 }
 0x65b   : > { %v1593_v14 = vsel %vm1247_vm4, %v3562_v13, 0.0 }
 0x65c   : > { %1594 = vadd.xlane.f32.xlu1 %v1593_v14  ;;  %v3480_v14 = vld [vmem:[%s4388_s7 + $0xc8] ss:$16 sps:$4 sm:$0xff]  }
 0x66d   : > { %1487 = vrot.lane.b32.xlu1 %v4457_v0, %s3997_s22 }
 0x66e   : > { %1375 = vrot.lane.b32.xlu0 %v4457_v0, %s3995_s14 }
 0x671   : > { %1599 = vrot.lane.b32.xlu1 %v4457_v0, %s3996_s2 }
 0x6d7   : > { %v1483_v15 = vpop.xlane.xlu0 %1482 }
 0x6e1   : > { %v1370_v16 = vpop.xlane.xlu0 %1369 }
 0x6e2   : > { %3563 = vrcp.f32 %v1370_v16 }
 0x6e3   : > { %3565 = vrcp.f32 %v1483_v15 }
 0x6e5   : > { %v1376_v17 = vpop.permute.xlu0 %1375  ;;  %v1595_v19 = vpop.xlane.xlu1 %1594 }
 0x6e6   : > { %v1381_v18 = vsel %vm1264_vm2, %v1376_v17, 0  ;;  %3567 = vrcp.f32 %v1595_v19  ;;  %v3485_v19 = vld [vmem:[%s4388_s7 + $0xa4] ss:$16 sps:$4 sm:$0xff]  }
 0x6e7   : > { %3204 = vmatpush3.bf16.msra.mxu1 %v1381_v18 }
 0x6e8   : > { %3215 = vmatprep.subr.bf16.mxu1 %v3992_v4 }
 0x6e9   : > { %v1488_v22 = vpop.permute.xlu1 %1487 }
 0x6ea   : > { %v1493_v26 = vsel %vm1264_vm2, %v1488_v22, 0  ;;  %v3486_v22 = vld [vmem:[%s4388_s7 + $0xa8] ss:$16 sps:$4 sm:$0xff]  }
 0x6ed   : > { %v1600_v27 = vpop.permute.xlu1 %1599 }
 0x6ee   : > { %v1605_v30 = vsel %vm1264_vm2, %v1600_v27, 0  ;;  %v3497_v27 = vld [vmem:[%s4388_s7 + $0x64] ss:$16 sps:$4 sm:$0xff]  }
 0x6ef   : > { %v3564_v20 = vpop.eup %3563 }
 0x6f0   : > { %v1372_v21 = vmul.f32 %v3564_v20, %v3560_v11  ;;  %v3566_v25 = vpop.eup %3565  ;;  %v3474_v11 = vld [vmem:[%s4388_s7 + $0xe8] ss:$16 sps:$4 sm:$0xff]   ;;  %v3488_v20 = vld [vmem:[%s4388_s7 + $0xac] ss:$16 sps:$4 sm:$0xff]  }
 0x6f1   : > { %v1485_v0 = vmul.f32 %v3566_v25, %v3558_v10  ;;  %v3471_v10 = vld [vmem:[%s4388_s7 + $0xe0] ss:$16 sps:$4 sm:$0xff]   ;;  %v3491_v25 = vld [vmem:[%s4388_s7 + $0x84] ss:$16 sps:$4 sm:$0xff]  }
 0x6f2   : > { %v1373_v24 = vpack.c.bf16 %v1372_v21, %v1372_v21  ;;  %v3483_v21 = vld [vmem:[%s4388_s7 + $0xa0] ss:$16 sps:$4 sm:$0xff]  }
 0x6f3   : > { %v1486_v28 = vpack.c.bf16 %v1485_v0, %v1485_v0  ;;  %v3568_v29 = vpop.eup %3567  ;;  %v3494_v0 = vld [vmem:[%s4388_s7 + $0x8c] ss:$16 sps:$4 sm:$0xff]  }
 0x6f4   : > { %3206 = vmatmul.mubr.msk.bf16.vlgmr.msra.gmra.mxu1 %vm1247_vm4, %v1373_v24  ;;  %v1597_v31 = vmul.f32 %v3568_v29, %v3562_v13  ;;  %v3479_v13 = vld [vmem:[%s4388_s7 + $0xc4] ss:$16 sps:$4 sm:$0xff]   ;;  %v3489_v24 = vld [vmem:[%s4388_s7 + $0x80] ss:$16 sps:$4 sm:$0xff]  }
 0x6f5   : > { %3216 = vmatpush3.bf16.msra.mxu1 %v1493_v26  ;;  %3217 = vmatprep.mubr.msk.bf16.mxu1 %vm3994_vm0, %v3992_v4  ;;  %v3492_v26 = vld [vmem:[%s4388_s7 + $0x88] ss:$16 sps:$4 sm:$0xff]   ;;  %v3495_v29 = vld [vmem:[%s4388_s7 + $0x60] ss:$16 sps:$4 sm:$0xff]  }
 0x6f6   : > { %3227 = vmatprep.subr.bf16.mxu1 %v3992_v4  ;;  %v1598_v32 = vpack.c.bf16 %v1597_v31, %v1597_v31  ;;  %v3503_v31 = vld [vmem:[%s4388_s7 + $0x44] ss:$16 sps:$4 sm:$0xff]  }
 0x6fc   : > { %3218 = vmatmul.mubr.msk.bf16.vlgmr.msra.gmra.mxu1 %vm1247_vm4, %v1486_v28  ;;  %v3500_v28 = vld [vmem:[%s4388_s7 + $0x6c] ss:$16 sps:$4 sm:$0xff]  }
 0x6fd   : > { %3228 = vmatpush3.bf16.msra.mxu1 %v1605_v30  ;;  %3229 = vmatprep.mubr.msk.bf16.mxu1 %vm3994_vm0, %v3992_v4  ;;  %v3498_v30 = vld [vmem:[%s4388_s7 + $0x68] ss:$16 sps:$4 sm:$0xff]  }
 0x6fe   : > { %2020 = vmatprep.subr.bf16.mxu1 %v3473_v5  ;;  %v3533_v5 = vld [vmem:[%s4357_s6 + $0x20] sm:$0xff]  }
 0x704   : > { %3230 = vmatmul.mubr.msk.bf16.vlgmr.msra.gmra.mxu1 %vm1247_vm4, %v1598_v32  ;;  %v3506_v32 = vld [vmem:[%s4388_s7 + $0x4c] ss:$16 sps:$4 sm:$0xff]  }
 0x705   : > { %2052 = vmatprep.mubr.bf16.mxu1 %v3993_v23  ;;  %2021 = vmatpush1.bf16.msra.mxu1 %v3471_v10  ;;  %v3532_v10 = vld [vmem:[%s4357_s6 + $0xe0] sm:$0xff]  }
 0x706   : > { %2022 = vmatprep.subr.bf16.mxu1 %v3479_v13  ;;  %v3536_v13 = vld [vmem:[%s4357_s6 + $0xd8] sm:$0xff]  }
 0x7b4   : > { %v1417_v41 = vpop.f32.mrf.mxu1 }
 0x7b5   : > { %1648 = vrot.lane.b32.xlu1 %v1417_v41, %s3996_s2  ;;  %v3518_v41 = vld [vmem:[%s4388_s7 + $0xc] ss:$16 sps:$4 sm:$0xff]  }
 0x7b6   : > { %v3207_v42 = vpop.f32.mrf.mxu1 }
 0x7b7   : > { %v3513_v42 = vld [vmem:[%s4388_s7] ss:$16 sps:$4 sm:$0xff]  }
 0x7b8   : > { %v1420_v47 = vpop.f32.mrf.mxu1 }
 0x7ba   : > { %v3208_v48 = vpop.f32.mrf.mxu1 }
 0x7bc   : > { %v1529_v49 = vpop.f32.mrf.mxu1 }
 0x7bd   : > { %1652 = vrot.lane.b32.xlu0 %v1529_v49, %s3997_s22 }
 0x7be   : > { %v3219_v51 = vpop.f32.mrf.mxu1 }
 0x7c0   : > { %v1532_v52 = vpop.f32.mrf.mxu1 }
 0x7c1   : > { %v2992_v52 = vld [vmem:[%s4824_s17] ss:$0 sm:$0xff] }
 0x7c2   : > { %v3220_v53 = vpop.f32.mrf.mxu1 }
 0x7c4   : > { %v1641_v54 = vpop.f32.mrf.mxu1 }
 0x7c5   : > { %1656 = vrot.lane.b32.xlu1 %v1641_v54, %s3995_s14  ;;  %v2993_v54 = vld [vmem:[%s4825_s27] ss:$0 sm:$0xff] }
 0x7c6   : > { %v3231_v55 = vpop.f32.mrf.mxu1 }
 0x7c8   : > { %v1644_v56 = vpop.f32.mrf.mxu1 }
 0x7ca   : > { %v3232_v57 = vpop.f32.mrf.mxu1 }
 0x827   : > { %v1649_v58 = vpop.permute.xlu1 %1648 }
 0x828   : > { %v1659_v59 = vsel %vm1198_vm1, %v4497_v34, %v1649_v58  ;;  %v3519_v58 = vld [vmem:[%s4357_s6 + $0x78] sm:$0xff]  }
 0x82f   : > { %v1653_v4 = vpop.permute.xlu0 %1652 }
 0x830   : > { %v1661_v60 = vsel %vm1660_vm5, %v1659_v59, %v1653_v4  ;;  %v3520_v4 = vld [vmem:[%s4357_s6 + $0xf8] sm:$0xff]  }
 0x831   : > { %v3521_v59 = vld [vmem:[%s4357_s6 + $0x38] sm:$0xff]  }
 0x837   : > { %v1657_v61 = vpop.permute.xlu1 %1656 }
 0x838   : > { %v1663_v62 = vsel %vm1662_vm6, %v1661_v60, %v1657_v61  ;;  %v3522_v60 = vld [vmem:[%s4357_s6 + $0xb8] sm:$0xff]   ;;  %v3523_v61 = vld [vmem:[%s4357_s6 + $0x70] sm:$0xff]  }
 0x839   : > { %v1664_v63 = vpack.c.bf16 %v1663_v62, %v1663_v62  ;;  %v3524_v62 = vld [vmem:[%s4357_s6 + $0xf0] sm:$0xff]  }
 0x83b   : > { %3250 = vmatmul.mubr.bf16.vlgmr.msra.gmra.mxu0 %v1664_v63  ;;  %v3525_v63 = vld [vmem:[%s4357_s6 + $0x30] sm:$0xff]  }
 0x83c   : > { %2093 = vmatprep.mubr.bf16.mxu0 %v3993_v23  ;;  %v3482_v23 = vld [vmem:[%s4388_s7 + $0xcc] ss:$16 sps:$4 sm:$0xff]   ;;  %2062 = vmatpush1.bf16.msra.mxu0 %v3474_v11 }
 0x83d   : > { %2063 = vmatprep.subr.bf16.mxu0 %v3482_v23  ;;  %v3534_v11 = vld [vmem:[%s4357_s6 + $0xa0] sm:$0xff]   ;;  %v3537_v23 = vld [vmem:[%s4357_s6 + $0x18] sm:$0xff]  }
 0x840   : > { %2064 = vmatpush1.bf16.msra.mxu0 %v3480_v14  ;;  %v3539_v14 = vld [vmem:[%s4357_s6 + $0x50] sm:$0xff]  }
 0x841   : > { %2065 = vmatprep.subr.bf16.mxu0 %v3488_v20  ;;  %v3545_v20 = vld [vmem:[%s4357_s6 + $0x8] sm:$0xff]  }
 0x844   : > { %2066 = vmatpush1.bf16.msra.mxu0 %v3486_v22  ;;  %v3547_v22 = vld [vmem:[%s4357_s6 + $0x40] sm:$0xff]  }
 0x845   : > { %2067 = vmatprep.subr.bf16.mxu0 %v3494_v0  ;;  %v1838_v0 = vld [vmem:[%s4355_s4] sm:$0xf] }
 0x848   : > { %2068 = vmatpush1.bf16.msra.mxu0 %v3492_v26  ;;  %v3550_v26 = vld [vmem:[%s4357_s6 + $0x80] sm:$0xff]  }
 0x849   : > { %2069 = vmatprep.subr.bf16.mxu0 %v3500_v28  ;;  %v1843_v28 = vrot.slane %v1838_v0, %v969_v50 }
 0x84c   : > { %2070 = vmatpush1.bf16.msra.mxu0 %v3498_v30  ;;  %v1847_v30 = vrot.slane %v1838_v0, %v973_v44 }
 0x84d   : > { %2071 = vmatprep.subr.bf16.mxu0 %v3506_v32 }
 0x850   : > { %2072 = vmatpush1.bf16.msra.mxu0 %v3504_v35 }
 0x851   : > { %2073 = vmatprep.subr.bf16.mxu0 %v3512_v37 }
 0x854   : > { %2074 = vmatpush1.bf16.msra.mxu0 %v3510_v39 }
 0x855   : > { %2075 = vmatprep.subr.bf16.mxu0 %v3518_v41 }
 0x858   : > { %2076 = vmatpush1.bf16.msra.mxu0 %v3516_v45 }
 0x859   : > { %3134 = vmatprep.subr.bf16.mxu0 %v3520_v4 }
 0x8fb   : > { %v1763_v2 = vpop.f32.mrf.mxu0 }
 0x8fc   : > { %v1769_v6 = vadd.f32 %v1763_v2, %v4393_v1  ;;  %v3477_v1 = vld [vmem:[%s4388_s7 + $0xc0] ss:$16 sps:$4 sm:$0xff]   ;;  %s4826_s7 = sld [smem:[#allocation29_spill]] }
 0x8fd   : > { %v3251_v7 = vpop.f32.mrf.mxu0  ;;  %2023 = vmatpush1.bf16.msra.mxu1 %v3477_v1  ;;  %v3526_v2 = vld [vmem:[%s4357_s6 + $0xb0] sm:$0xff]   ;;  %v3538_v1 = vld [vmem:[%s4357_s6 + $0x98] sm:$0xff]  }
 0x8fe   : > { %v4557_v34 = vadd.f32 %v2991_v3, %v1769_v6  ;;  %2024 = vmatprep.subr.bf16.mxu1 %v3485_v19  ;;  %v3527_v3 = vld [vmem:[%s4357_s6 + $0x68] sm:$0xff]  }
 0x8ff   : > { %v1766_v8 = vpop.f32.mrf.mxu0  ;;  %v3528_v6 = vld [vmem:[%s4357_s6 + $0xe8] sm:$0xff]  }
 0x900   : > { %1780 = vadd.xlane.f32.xlu0 %v4557_v34  ;;  %v3529_v7 = vld [vmem:[%s4357_s6 + $0x28] sm:$0xff]  }
 0x901   : > { %v3252_v9 = vpop.f32.mrf.mxu0  ;;  %2025 = vmatpush1.bf16.msra.mxu1 %v3483_v21  ;;  %v3530_v8 = vld [vmem:[%s4357_s6 + $0xa8] sm:$0xff]  }
 0x902   : > { %2026 = vmatprep.subr.bf16.mxu1 %v3491_v25  ;;  %v3531_v9 = vld [vmem:[%s4357_s6 + $0x60] sm:$0xff]   ;;  %v3544_v19 = vld [vmem:[%s4357_s6 + $0xc8] sm:$0xff]   ;;  %p3059_p3 = scmp.ne.s32.totalorder %s4826_s7, 1 }
 0x903   : > { %v3546_v21 = vld [vmem:[%s4357_s6 + $0x88] sm:$0xff]   ;;  %v3549_v25 = vld [vmem:[%s4357_s6] sm:$0xff]   ;;  %s4827_s15 = sld [smem:[#allocation52_spill]] (!%p3059_p3) }
 0x904   : > { %s4828_s2 = sld [smem:[#allocation50_spill]] (!%p3059_p3) }
 0x905   : > { %2027 = vmatpush1.bf16.msra.mxu1 %v3489_v24  ;;  %v3548_v24 = vld [vmem:[%s4357_s6 + $0xc0] sm:$0xff]   ;;  %s4829_s17 = sld [smem:[#allocation51_spill]] (!%p3059_p3) }
 0x906   : > { %2028 = vmatprep.subr.bf16.mxu1 %v3497_v27  ;;  %v1854_v27 = vsub.s32 3, %v4442_v43 }
 0x909   : > { %2029 = vmatpush1.bf16.msra.mxu1 %v3495_v29  ;;  %v1851_v29 = vrot.slane %v1838_v0, %v977_v46 }
 0x90a   : > { %2030 = vmatprep.subr.bf16.mxu1 %v3503_v31  ;;  %v1855_v31 = vrot.slane %v1838_v0, %v1854_v27 }
 0x90d   : > { %2031 = vmatpush1.bf16.msra.mxu1 %v3501_v33 }
 0x90e   : > { %2032 = vmatprep.subr.bf16.mxu1 %v3509_v36 }
 0x911   : > { %2033 = vmatpush1.bf16.msra.mxu1 %v3507_v38 }
 0x912   : > { %2034 = vmatprep.subr.bf16.mxu1 %v3515_v40 }
 0x915   : > { %2035 = vmatpush1.bf16.msra.mxu1 %v3513_v42 }
 0x916   : > { %3112 = vmatprep.subr.bf16.mxu1 %v3519_v58 }
 0x989   : > { %v1781_v15 = vpop.xlane.xlu0 %1780 }
 0x98a   : > { %v1782_v16 = vmul.f32 0.0078125, %v1781_v15  ;;  %v3540_v15 = vld [vmem:[%s4357_s6 + $0xd0] sm:$0xff]  }
 0x98c   : > { %v1783_v17 = vsub.f32 %v4557_v34, %v1782_v16  ;;  %v3541_v16 = vld [vmem:[%s4357_s6 + $0x10] sm:$0xff]  }
 0x98e   : > { %v1784_v18 = vmul.f32 %v1783_v17, %v1783_v17 }
 0x990   : > { %1785 = vadd.xlane.f32.xlu1 %v1784_v18  ;;  %v3543_v18 = vld [vmem:[%s4357_s6 + $0x48] sm:$0xff]  }
 0xa19   : > { %v1786_v47 = vpop.xlane.xlu1 %1785 }
 0xa1a   : > { %v1787_v48 = vmul.f32 0.0078125, %v1786_v47 }
 0xa1c   : > { %v1788_v49 = vadd.f32 1e-05, %v1787_v48 }
 0xa1e   : > { %3569 = vrsqrt.f32 %v1788_v49 }
 0xa2b   : > { %v3570_v51 = vpop.eup %3569 }
 0xa2c   : > { %v1790_v53 = vmul.f32 %v3570_v51, %v1783_v17  ;;  %v3542_v17 = vld [vmem:[%s4357_s6 + $0x90] sm:$0xff]  }
 0xa2e   : > { %v1797_v55 = vmul.f32 %v2992_v52, %v1790_v53 }
 0xa30   : > { %v1804_v56 = vadd.f32 %v2993_v54, %v1797_v55 }
 0xa32   : > { %v1805_v57 = vpack.c.bf16 %v1804_v56, %v1804_v56 }
 0xa34   : > { %2053 = vmatmul.mubr.bf16.vlgmr.msra.gmra.mxu1 %v1805_v57  ;;  %2094 = vmatmul.mubr.bf16.vlgmr.msra.gmra.mxu0 %v1805_v57 }
 0xa35   : > { %3113 = vmatpush3.bf16.msra.mxu1 %v3521_v59  ;;  %3135 = vmatpush3.bf16.msra.mxu0 %v3522_v60 }
 0xa36   : > { %3114 = vmatprep.subr.bf16.mxu1 %v3523_v61  ;;  %3136 = vmatprep.subr.bf16.mxu0 %v3524_v62 }
 0xa39   : > { %3115 = vmatpush3.bf16.msra.mxu1 %v3525_v63  ;;  %3137 = vmatpush3.bf16.msra.mxu0 %v3526_v2 }
 0xa3a   : > { %3116 = vmatprep.subr.bf16.mxu1 %v3527_v3  ;;  %3138 = vmatprep.subr.bf16.mxu0 %v3528_v6 }
 0xa3d   : > { %3117 = vmatpush3.bf16.msra.mxu1 %v3529_v7  ;;  %3139 = vmatpush3.bf16.msra.mxu0 %v3530_v8 }
 0xa3e   : > { %3118 = vmatprep.subr.bf16.mxu1 %v3531_v9  ;;  %3140 = vmatprep.subr.bf16.mxu0 %v3532_v10 }
 0xa41   : > { %3119 = vmatpush3.bf16.msra.mxu1 %v3533_v5  ;;  %3141 = vmatpush3.bf16.msra.mxu0 %v3534_v11 }
 0xa42   : > { %3120 = vmatprep.subr.bf16.mxu1 %v3535_v12  ;;  %3142 = vmatprep.subr.bf16.mxu0 %v3536_v13 }
 0xa45   : > { %3121 = vmatpush3.bf16.msra.mxu1 %v3537_v23  ;;  %3143 = vmatpush3.bf16.msra.mxu0 %v3538_v1 }
 0xa46   : > { %3122 = vmatprep.subr.bf16.mxu1 %v3539_v14  ;;  %3144 = vmatprep.subr.bf16.mxu0 %v3540_v15 }
 0xa49   : > { %3123 = vmatpush3.bf16.msra.mxu1 %v3541_v16  ;;  %3145 = vmatpush3.bf16.msra.mxu0 %v3542_v17 }
 0xa4a   : > { %3124 = vmatprep.subr.bf16.mxu1 %v3543_v18  ;;  %3146 = vmatprep.subr.bf16.mxu0 %v3544_v19 }
 0xa4d   : > { %3125 = vmatpush3.bf16.msra.mxu1 %v3545_v20  ;;  %3147 = vmatpush3.bf16.msra.mxu0 %v3546_v21 }
 0xa4e   : > { %3126 = vmatprep.subr.bf16.mxu1 %v3547_v22  ;;  %3148 = vmatprep.subr.bf16.mxu0 %v3548_v24 }
 0xa51   : > { %3127 = vmatpush3.bf16.msra.mxu1 %v3549_v25  ;;  %3149 = vmatpush3.bf16.msra.mxu0 %v3550_v26 }
 0xaf4   : > { %v2054_v32 = vpop.f32.mrf.mxu1  ;;  %v2095_v33 = vpop.f32.mrf.mxu0 }
 0xaf5   : > { %v2055_v35 = vadd.f32 %v2054_v32, %v1843_v28  ;;  %v2096_v36 = vadd.f32 %v2095_v33, %v1851_v29 }
 0xaf6   : > { %v2056_v37 = vpop.f32.mrf.mxu1  ;;  %v2097_v38 = vpop.f32.mrf.mxu0 }
 0xaf7   : > { %v2102_v39 = vmul.f32 %v2055_v35, %v2055_v35  ;;  %v2104_v40 = vmul.f32 %v2096_v36, %v2096_v36  ;;  %v2057_v41 = vadd.f32 %v2056_v37, %v1847_v30  ;;  %v2098_v42 = vadd.f32 %v2097_v38, %v1855_v31  ;;  %v3058_v31 = vld [vmem:[%s777_s5] ss:$0 sm:$0xff] }
 0xaf8   : > { %v2058_v45 = vpop.f32.mrf.mxu1  ;;  %v2099_v47 = vpop.f32.mrf.mxu0 }
 0xaf9   : > { %v2106_v50 = vmul.f32 %v2102_v39, %v2055_v35  ;;  %v2108_v48 = vmul.f32 %v2104_v40, %v2096_v36  ;;  %v2103_v49 = vmul.f32 %v2057_v41, %v2057_v41  ;;  %v2105_v46 = vmul.f32 %v2098_v42, %v2098_v42 }
 0xafa   : > { %v2059_v51 = vpop.f32.mrf.mxu1  ;;  %v2100_v43 = vpop.f32.mrf.mxu0 }
 0xafb   : > { %v2110_v44 = vmul.f32 0.044715, %v2106_v50  ;;  %v2112_v52 = vmul.f32 0.044715, %v2108_v48  ;;  %v2107_v53 = vmul.f32 %v2103_v49, %v2057_v41  ;;  %v2109_v54 = vmul.f32 %v2105_v46, %v2098_v42 }
 0xafd   : > { %v2114_v55 = vadd.f32 %v2110_v44, %v2055_v35  ;;  %v2116_v56 = vadd.f32 %v2112_v52, %v2096_v36  ;;  %v2111_v57 = vmul.f32 0.044715, %v2107_v53  ;;  %v2113_v58 = vmul.f32 0.044715, %v2109_v54 }
 0xaff   : > { %v2118_v4 = vmul.f32 0.7978846, %v2114_v55  ;;  %v2120_v59 = vmul.f32 0.7978846, %v2116_v56  ;;  %v2115_v60 = vadd.f32 %v2111_v57, %v2057_v41  ;;  %v2117_v61 = vadd.f32 %v2113_v58, %v2098_v42 }
 0xb01   : > { %3571 = vtanh.f32 %v2118_v4  ;;  %v2119_v62 = vmul.f32 0.7978846, %v2115_v60  ;;  %v2121_v63 = vmul.f32 0.7978846, %v2117_v61 }
 0xb02   : > { %3573 = vtanh.f32 %v2120_v59 }
 0xb03   : > { %3575 = vtanh.f32 %v2119_v62 }
 0xb04   : > { %3577 = vtanh.f32 %v2121_v63 }
 0xb0e   : > { %v3572_v2 = vpop.eup %3571 }
 0xb0f   : > { %v3574_v3 = vpop.eup %3573  ;;  %v2126_v6 = vadd.f32 1.0, %v3572_v2 }
 0xb10   : > { %v3576_v7 = vpop.eup %3575  ;;  %v2128_v8 = vadd.f32 1.0, %v3574_v3 }
 0xb11   : > { %v3578_v9 = vpop.eup %3577  ;;  %v2127_v10 = vadd.f32 1.0, %v3576_v7  ;;  %v2130_v5 = vmul.f32 0.5, %v2126_v6 }
 0xb12   : > { %v2129_v11 = vadd.f32 1.0, %v3578_v9  ;;  %v2132_v12 = vmul.f32 0.5, %v2128_v8 }
 0xb13   : > { %v2131_v13 = vmul.f32 0.5, %v2127_v10  ;;  %v2134_v1 = vmul.f32 %v2130_v5, %v2055_v35 }
 0xb14   : > { %v2133_v23 = vmul.f32 0.5, %v2129_v11  ;;  %v2136_v15 = vmul.f32 %v2132_v12, %v2096_v36 }
 0xb15   : > { %v2135_v14 = vmul.f32 %v2131_v13, %v2057_v41  ;;  %v2138_v19 = vpack.c.bf16 %v2134_v1, %v2134_v1 }
 0xb16   : > { %v2137_v16 = vmul.f32 %v2133_v23, %v2098_v42  ;;  %v2140_v20 = vpack.c.bf16 %v2136_v15, %v2136_v15 }
 0xb17   : > { %v2139_v17 = vpack.c.bf16 %v2135_v14, %v2135_v14 }
 0xb18   : > { %v2141_v18 = vpack.c.bf16 %v2137_v16, %v2137_v16 }
 0xb19   : > { %2430 = vmatprep.mubr.bf16.mxu1 %v2139_v17 }
 0xb1a   : > { %2470 = vmatprep.mubr.bf16.mxu0 %v2141_v18  ;;  %2431 = vmatmul.mubr.bf16.vlgmr.msra.gmra.mxu1 %v2138_v19 }
 0xb1b   : > { %2471 = vmatmul.mubr.bf16.vlgmr.msra.gmra.mxu0 %v2140_v20 }
 0xbda   : > { %v3128_v21 = vpop.f32.mrf.mxu1 }
 0xbdb   : > { %v3150_v22 = vpop.f32.mrf.mxu0 }
 0xbdc   : > { %v3129_v24 = vpop.f32.mrf.mxu1 }
 0xbdd   : > { %v3130_v25 = vadd.f32 %v3129_v24, %v3128_v21  ;;  %v3151_v26 = vpop.f32.mrf.mxu0 }
 0xbde   : > { %v3152_v0 = vadd.f32 %v3151_v26, %v3150_v22  ;;  %v3131_v27 = vpop.f32.mrf.mxu1 }
 0xbdf   : > { %v3153_v28 = vpop.f32.mrf.mxu0 }
 0xbe0   : > { %v2473_v29 = vadd.f32 %v3152_v0, %v3130_v25  ;;  %v3132_v30 = vpop.f32.mrf.mxu1 }
 0xbe1   : > { %v3154_v32 = vpop.f32.mrf.mxu0 }
 0xbe2   : > { %v2478_v33 = vadd.f32 %v2473_v29, %v4557_v34  ;;  %2491 = sbr.rel (%p3059_p3) target bundleno = 3554 (0xde2), region = 128 }
 0xbe4   : > { %v2486_v35 = vadd.f32 %v3058_v31, %v2478_v33 }
 0xbe6   : > { %2487 = vst [vmem:[#allocation2] sm:$0xff] %v2486_v35 }
 0xbe7   : > { %2494 = vadd.xlane.f32.xlu0 %v2486_v35  ;;  %v3579_v36 = vld [vmem:[%s4827_s15 + $0x38] sm:$0xff]   ;;  %v3998_v37 = vmov 0.0   ;;  %v3580_v34 = vld [vmem:[%s4827_s15 + $0x30] sm:$0xff]   ;;  %v3581_v42 = vld [vmem:[%s4827_s15 + $0x28] sm:$0xff]   ;;  %vm3999_vm7 = vmmov 0  }
 0xbe8   : > { %3253 = vmatprep.subr.bf16.mxu0 %v3998_v37  ;;  %v3582_v45 = vld [vmem:[%s4827_s15 + $0x20] sm:$0xff]   ;;  %3269 = vmatprep.mubr.msk.bf16.mxu0 %vm3999_vm7, %v3998_v37  ;;  %v3583_v47 = vld [vmem:[%s4827_s15 + $0x18] sm:$0xff]   ;;  %v3584_v50 = vld [vmem:[%s4827_s15 + $0x10] sm:$0xff]  }
 0xbe9   : > { %3254 = vmatpush3.bf16.msra.mxu0 %v3579_v36  ;;  %v3585_v48 = vld [vmem:[%s4827_s15 + $0x8] sm:$0xff]   ;;  %v3586_v49 = vld [vmem:[%s4827_s15] sm:$0xff]  }
 0xbea   : > { %3255 = vmatprep.subr.bf16.mxu0 %v3998_v37  ;;  %v3060_v52 = vld [vmem:[%s4828_s2] ss:$0 sm:$0xff] }
 0xbeb   : > { %v3061_v54 = vld [vmem:[%s4829_s17] ss:$0 sm:$0xff] }
 0xbed   : > { %3256 = vmatpush3.bf16.msra.mxu0 %v3580_v34 }
 0xbee   : > { %3257 = vmatprep.subr.bf16.mxu0 %v3998_v37 }
 0xbf1   : > { %3258 = vmatpush3.bf16.msra.mxu0 %v3581_v42 }
 0xbf2   : > { %3259 = vmatprep.subr.bf16.mxu0 %v3998_v37 }
 0xbf5   : > { %3260 = vmatpush3.bf16.msra.mxu0 %v3582_v45 }
 0xbf6   : > { %3261 = vmatprep.subr.bf16.mxu0 %v3998_v37 }
 0xbf9   : > { %3262 = vmatpush3.bf16.msra.mxu0 %v3583_v47 }
 0xbfa   : > { %3263 = vmatprep.subr.bf16.mxu0 %v3998_v37 }
 0xbfd   : > { %3264 = vmatpush3.bf16.msra.mxu0 %v3584_v50 }
 0xbfe   : > { %3265 = vmatprep.subr.bf16.mxu0 %v3998_v37 }
 0xc01   : > { %3266 = vmatpush3.bf16.msra.mxu0 %v3585_v48 }
 0xc02   : > { %3267 = vmatprep.subr.bf16.mxu0 %v3998_v37 }
 0xc05   : > { %3268 = vmatpush3.bf16.msra.mxu0 %v3586_v49 }
 0xc70   : > { %v2495_v38 = vpop.xlane.xlu0 %2494 }
 0xc71   : > { %v2496_v39 = vmul.f32 0.0078125, %v2495_v38 }
 0xc73   : > { %v2497_v40 = vsub.f32 %v2486_v35, %v2496_v39 }
 0xc75   : > { %v2498_v41 = vmul.f32 %v2497_v40, %v2497_v40 }
 0xc77   : > { %2499 = vadd.xlane.f32.xlu0 %v2498_v41 }
 0xd00   : > { %v2500_v46 = vpop.xlane.xlu0 %2499 }
 0xd01   : > { %v2501_v51 = vmul.f32 0.0078125, %v2500_v46 }
 0xd03   : > { %v2502_v43 = vadd.f32 1e-05, %v2501_v51 }
 0xd05   : > { %3587 = vrsqrt.f32 %v2502_v43 }
 0xd12   : > { %v3588_v44 = vpop.eup %3587 }
 0xd13   : > { %v2504_v53 = vmul.f32 %v3588_v44, %v2497_v40 }
 0xd15   : > { %v2511_v55 = vmul.f32 %v3060_v52, %v2504_v53 }
 0xd17   : > { %v2518_v56 = vadd.f32 %v3061_v54, %v2511_v55 }
 0xd19   : > { %v2519_v57 = vpack.c.bf16 %v2518_v56, %v2518_v56 }
 0xd1b   : > { %3270 = vmatmul.mubr.bf16.vlgmr.msra.gmra.mxu0 %v2519_v57 }
 0xddb   : > { %v2618_v58 = vpop.f32.mrf.mxu0 }
 0xddc   : > { %2624 = vst [vmem:[%s877_s30] sm:$0xff] %v2618_v58 }
 0xddd   : > { %v3271_v4 = vpop.f32.mrf.mxu0 }
 0xddf   : > { %v2621_v59 = vpop.f32.mrf.mxu0 }
 0xde1   : > { %v3272_v60 = vpop.f32.mrf.mxu0 }
 0xde2 PF: > { %s4830_s27 = sld [smem:[#allocation30_spill]]  ;;  %s2639_s20 = sshll.u32 %s877_s30, 4  ;;  %s2640_s20 = int_to_ptr.vmem [resolvable:$true] %s2639_s20 }
 0xde3   : > { %s4831_s7 = sld [smem:[#allocation26_spill]]  ;;  %s3841_s23 = scalar_lea.vmem %s2640_s20, 128 }
 0xde4   : > { %s4833_s9 = sld [smem:[#allocation53_spill]]  ;;  %p3842_p9 = scmp.ne.s32.totalorder %s2640_s20, %s3841_s23 }
 0xde5   : > { %s4000_s18 = smov [#allocation18]  }
 0xde6   : > { %p3843_p10 = pnand %p3842_p9, %p4178_p12  ;;  %s3845_s0 = sshll.u32 %s4000_s18, 4  ;;  %s3846_s0 = int_to_ptr.vmem [resolvable:$false] %s3845_s0 }
 0xde7   : > { %s3847_s24 = scalar_lea.vmem %s3846_s0, 256  ;;  %p3848_p5 = scmp.lt.s32.totalorder %s2640_s20, %s3846_s0 }
 0xde8   : > { %s3071_s6 = sshll.u32 %s4830_s27, 7  ;;  %p3844_p11 = pneg %p3843_p10 }
 0xde9   : > { %s4834_s26 = sand.u32 1, %s4831_s7   ;;  %p3849_p6 = scmp.lt.s32.totalorder %s3847_s24, %s3841_s23 }
 0xdea   : > { %s2637_s19 = scalar_lea.hbm %s4833_s9, %s3071_s6  ;;  %s2626_s11 = scalar_lea.sflag [#allocation5], %s4834_s26 }
 0xdeb   : > { %p3850_p13 = por %p3849_p6, %p3848_p5 }
 0xded   : > { %p3851_p0 = pnand %p3850_p13, %p3844_p11 }
 0xdef   : > { %3854 = shalt.err (!%p3851_p0)
}
 0xdf0   : > { %s3855_s8 = scalar_lea.hbm %s2637_s19, 128  ;;  %s3859_s5 = scalar_lea.hbm %s4833_s9, 256 }
 0xdf1   : > { %p3856_p1 = scmp.ne.s32.totalorder %s2637_s19, %s3855_s8  ;;  %p3860_p8 = scmp.lt.s32.totalorder %s2637_s19, %s4833_s9 }
 0xdf2   : > { %p3861_p3 = scmp.lt.s32.totalorder %s3859_s5, %s3855_s8 }
 0xdf3   : > { %p3857_p4 = pnand %p3856_p1, %p4178_p12 }
 0xdf4   : > { %p3862_p9 = por %p3861_p3, %p3860_p8 }
 0xdf5   : > { %p3858_p7 = pneg %p3857_p4 }
 0xdf7   : > { %p3863_p10 = pnand %p3862_p9, %p3858_p7 }
 0xdf9   : > { %3866 = shalt.err (!%p3863_p10)
}
 0xdfa   : > { %3295 = dma.vmem_to_hbm [thread:$0]  (%p4178_p12), %s2640_s20, 128, %s2637_s19, %s2626_s11  }
 0xdfb PF: > { %s4835_s14 = sld [smem:[#allocation32_spill]] }
 0xdfc   : > { %s4836_s2 = sld [smem:[#allocation25_spill]] }
 0xe01   : > { %p3330_p11 = scmp.ge.s32.totalorder %s4835_s14, 2 }
 0xe02   : > { %s2651_s13 = sand.u32 1, %s4836_s2  }
 0xe03   : > { %p3326_p5 = pnand %p3330_p11, %p4188_p2  ;;  %s2652_s17 = scalar_lea.sflag [#allocation5], %s2651_s13 }
 0xe05   : > { %p3327_p6 = pneg %p3326_p5 }
 0xe07   : > { %3932 = dma.done.wait (%p3327_p6), %s2652_s17, 128  }
 0xe08   : > { %3934 = vsyncadd (%p3327_p6), %s2652_s17, 4294967168  ;;  %s44_s0 = sadd.s32 1, %s4835_s14   ;;  %s4838_s21 = sld [smem:[#allocation26_spill]] }
 0xe09   : > { %p41_p13 = scmp.ge.s32.totalorder %s44_s0, 6   ;;  %s4839_s22 = sld [smem:[#allocation27_spill]] }
 0xe0a   : > { %s4840_s23 = sld [smem:[#allocation36_spill]]  ;;  %s4846_s24 = smov %s3953_s25 }
 0xe0b   : > { %s4841_s27 = sld [smem:[#allocation28_spill]] }
 0xe0c   : > { %s4842_s26 = sld [smem:[#allocation35_spill]] }
 0xe0d   : > { %s4843_s28 = sld [smem:[#allocation31_spill]] }
 0xe0e   : > { %s4844_s7 = sld [smem:[#allocation33_spill]] }
 0xe0f   : > { %s4845_s30 = sld [smem:[#allocation34_spill]] }
 0xe10   :  { %43 = sbr.rel (!%p41_p13) target bundleno = 33 (0x21), region = 245 }
 0xe11   : > { %s4847_s25 = smov %s4841_s27  ;;  %s4848_s27 = smov %s3969_s29 }
 0xe14   : > { %s4849_s29 = smov %s4844_s7 }
 0xe15   :  { %2657 = vsyncpa [#allocation4], 1 }
 0xe16   :  { %2659 = vsyncpa [#allocation4 + $0x1], 1 }
 0xe17   :  { %2660 = vsyncpa [#allocation7], 1 }
 0xe18   :  { %2662 = vsyncpa [#allocation7 + $0x1], 1 }
 0xe19   :  { %2663 = vsyncpa [#allocation10], 1 }
 0xe1a   :  { %2665 = vsyncpa [#allocation10 + $0x1], 1 }
 0xe1b   :  { %2666 = vsyncpa [#allocation13], 1 }
 0xe1c   :  { %2668 = vsyncpa [#allocation13 + $0x1], 1 }
 0xe1d   :  { %2669 = vsyncpa [#allocation16], 1 }
 0xe1e   :  { %2671 = vsyncpa [#allocation16 + $0x1], 1 }
 0xe1f   :  { %2672 = vsyncpa [#allocation5], 1 }
 0xe20   :  { %2674 = vsyncpa [#allocation5 + $0x1], 1 }

</bundles_post_ra>
